<compile_context>
chip_gen: v5e
topology: v5e:2x2
jax: 0.10.0
libtpu: 0.0.40
codegen_flags: <defaults>
</compile_context>

<pallas_src>
import functools

import jax
import jax.numpy as jnp
from jax import lax
from jax.experimental import pallas as pl
from jax.experimental.pallas import tpu as pltpu


# ---------------------------------------------------------------------------
# VMEM-aware tile selection.
# ---------------------------------------------------------------------------
def _vmem_capacity_bytes():
    try:
        return int(pltpu.get_tpu_info().vmem_capacity_bytes)
    except Exception:
        return 64 * 1024 * 1024        # conservative (v7x-sized) fallback


def _largest_divisor_tile(n, cap):
    """Largest multiple-of-128 divisor of n that is <= cap (n itself if n <= cap).

    Falls back to n (one full tile) when no such divisor exists, so the grid math
    always stays exact for the caller.
    """
    if n <= cap:
        return n
    t = (cap // 128) * 128
    while t >= 128:
        if n % t == 0:
            return t
        t -= 128
    return n


def _image_tiling():
    """Per-generation (d3_tile cap, spatial tile cap, vmem_limit_bytes).

    Sized so the (thw, d3_tile) f32 dot intermediate plus its elementwise epilogue
    temporaries stay well under the physical VMEM budget:
      v5e/v6e (128 MiB): 2048 x 2048 (16 MiB live)  -> limit 96 MiB
      v7x     ( 64 MiB): 1024 x 2048 ( 8 MiB live)  -> limit 48 MiB
    """
    cap = _vmem_capacity_bytes()
    if cap >= 96 * 1024 * 1024:
        return 2048, 2048, 96 * 1024 * 1024
    return 1024, 2048, 48 * 1024 * 1024


# ---------------------------------------------------------------------------
# Image path: fused branch projection + ReLU + global-average-pool kernel.
# Grid = (batch, d3_tiles, spatial_tiles); the spatial axis is the reduction.
# ---------------------------------------------------------------------------
def _fused_branch_pool_kernel(img_ref, wt_ref, brow_ref, o_ref, *,
                              inv_hw, hw, thw, needs_mask):
    """
    img_ref  : (C, thw)        lane-dense spatial tile of one image (C on sublanes)
    wt_ref   : (C, d3_tile)    fused branch weights, D3 on lanes (object|sentiment|scene)
    brow_ref : (1, d3_tile)    fused branch biases, lane-dense row
    o_ref    : (1, d3_tile)    pooled branch features (resident accumulator, lane-dense)
    """
    si = pl.program_id(2)

    @pl.when(si == 0)
    def _init():
        o_ref[...] = jnp.zeros_like(o_ref)

    # In-kernel cast: the image streams from HBM in its stored dtype (f32); the MXU sees
    # bf16 (the weight's dtype) with f32 accumulation — no extra HBM cast pass.
    x = img_ref[...].astype(wt_ref.dtype)                          # (C, thw)
    # x^T @ w on the MXU -> (thw, d3_tile): spatial on sublanes, D3 lane-dense, so the
    # running sum and the HBM-facing output block are lane-dense (no masked stores).
    y = lax.dot_general(x, wt_ref[...], (((0,), (0,)), ((), ())),
                        preferred_element_type=jnp.float32)
    y = jnp.maximum(y + brow_ref[...], 0.0)                        # bias + ReLU, f32 (VPU)
    if needs_mask:                                                 # partial last spatial tile
        row = lax.broadcasted_iota(jnp.int32, (thw, 1), 0) + si * thw
        y = jnp.where(row < hw, y, 0.0)
    o_ref[...] += jnp.sum(y, axis=0, keepdims=True)                # partial spatial sum

    @pl.when(si == pl.num_programs(2) - 1)
    def _finalize():
        o_ref[...] = o_ref[...] * inv_hw                           # sum -> global-average-pool


def image_branch_features(image_nchw, w1, w2, w3, b1, b2, b3, *,
                          compute_dtype=jnp.bfloat16):
    """cat([object(x), sentiment(x), scene(x)], dim=1): fused projection + ReLU + GAP."""
    B, C, H, W = image_nchw.shape
    HW = H * W
    Dbk = w1.shape[1]
    D3 = 3 * Dbk

    # Fused branch weights: (w1 | w2 | w3) column order matches torch.cat([o1,o2,o3], 1).
    # Kept (C, D3) so D3 rides the lane axis (no 3->128 lane padding on the weight block).
    wt = jnp.concatenate([w1, w2, w3], axis=1)                                     # (C, D3)
    brow = jnp.concatenate([jnp.reshape(b1, (1, Dbk)), jnp.reshape(b2, (1, Dbk)),
                            jnp.reshape(b3, (1, Dbk))], axis=1).astype(jnp.float32)  # (1, D3)
    if compute_dtype is not None:
        wt = wt.astype(compute_dtype)      # tiny; the image itself is cast in-kernel

    img = image_nchw.reshape(B, C, HW)     # lane-dense spatial stream, no transpose / copy

    d3_cap, thw_cap, vmem_limit = _image_tiling()
    d3_tile = _largest_divisor_tile(D3, d3_cap)
    thw = _largest_divisor_tile(HW, thw_cap)
    if thw > thw_cap:                      # no clean divisor: bounded tile + masked tail
        thw = max((thw_cap // 128) * 128, 128)
    n_sp = -(-HW // thw)
    needs_mask = (HW % thw) != 0
    n_d3 = D3 // d3_tile

    feat = pl.pallas_call(
        functools.partial(_fused_branch_pool_kernel, inv_hw=1.0 / HW,
                          hw=HW, thw=thw, needs_mask=needs_mask),
        out_shape=jax.ShapeDtypeStruct((B, 1, D3), jnp.float32),
        grid=(B, n_d3, n_sp),
        in_specs=[
            pl.BlockSpec((pl.Squeezed(), C, thw), lambda b, d, s: (b, 0, s)),
            pl.BlockSpec((C, d3_tile), lambda b, d, s: (0, d)),
            pl.BlockSpec((1, d3_tile), lambda b, d, s: (0, d)),
        ],
        out_specs=pl.BlockSpec((pl.Squeezed(), 1, d3_tile), lambda b, d, s: (b, 0, d)),
        compiler_params=pltpu.CompilerParams(
            # batch and D3 tiles parallel (v7x megacore), spatial axis is the reduction.
            dimension_semantics=("parallel", "parallel", "arbitrary"),
            vmem_limit_bytes=vmem_limit),
        cost_estimate=pl.CostEstimate(
            flops=2 * B * HW * C * D3,
            transcendentals=0,
            bytes_accessed=int(img.size * img.dtype.itemsize
                               + wt.size * wt.dtype.itemsize
                               + brow.size * 4 + B * D3 * 4)),
    )(img, wt, brow)
    return feat.reshape(B, D3)             # lane-dense pooled features, no relayout needed


# ---------------------------------------------------------------------------
# Shared batched linear kernel (image fc and poem fc): y = x @ w + b, K-tiled.
# ---------------------------------------------------------------------------
def _linear_kernel(x_ref, w_ref, b_ref, o_ref, acc_ref):
    k = pl.program_id(0)

    @pl.when(k == 0)
    def _init():
        acc_ref[...] = jnp.zeros_like(acc_ref)

    x = x_ref[...].astype(w_ref.dtype)      # MXU input dtype follows the stored weight
    acc_ref[...] += jnp.dot(x, w_ref[...], preferred_element_type=jnp.float32)

    @pl.when(k == pl.num_programs(0) - 1)
    def _finalize():
        o_ref[...] = (acc_ref[...] + b_ref[...]).astype(o_ref.dtype)


def linear(x, w, b, *, compute_dtype=None, k_tile_cap=2048):
    """Batched y = x @ w + b with the contraction tiled as a pipelined reduction."""
    M, K = x.shape
    F = w.shape[1]
    if compute_dtype is not None and w.dtype != compute_dtype:
        # TODO(synk): in a real deployment store the fc weights in bf16 once instead of
        # casting per call (per-call astype is an extra HBM pass over the weight).
        w = w.astype(compute_dtype)
    b = jnp.asarray(b, jnp.float32).reshape(1, F)
    tk = _largest_divisor_tile(K, k_tile_cap)
    n_k = K // tk
    return pl.pallas_call(
        _linear_kernel,
        out_shape=jax.ShapeDtypeStruct((M, F), jnp.float32),
        grid=(n_k,),
        in_specs=[
            pl.BlockSpec((M, tk), lambda k: (0, k)),
            pl.BlockSpec((tk, F), lambda k: (k, 0)),
            pl.BlockSpec((1, F), lambda k: (0, 0)),
        ],
        out_specs=pl.BlockSpec((M, F), lambda k: (0, 0)),
        scratch_shapes=[pltpu.VMEM((M, F), jnp.float32)],
        compiler_params=pltpu.CompilerParams(
            dimension_semantics=("arbitrary",),
            vmem_limit_bytes=32 * 1024 * 1024),
        cost_estimate=pl.CostEstimate(
            flops=2 * M * K * F, transcendentals=0,
            bytes_accessed=int(x.size * x.dtype.itemsize + w.size * w.dtype.itemsize
                               + b.size * 4 + M * F * 4)),
    )(x, w, b)


# ---------------------------------------------------------------------------
# ImageEmbedder.forward / PoemEmbedder.forward
# ---------------------------------------------------------------------------
def image_embedder(image_nchw, w1, w2, w3, b1, b2, b3, fc_w, fc_b, *,
                   compute_dtype=jnp.bfloat16, fc_dtype=None):
    """fc(cat([branch1(x), branch2(x), branch3(x)], dim=1)) for NCHW input."""
    feat = image_branch_features(image_nchw, w1, w2, w3, b1, b2, b3,
                                 compute_dtype=compute_dtype)        # (B, 3*Dbk)
    return linear(feat, fc_w, fc_b, compute_dtype=fc_dtype)          # self.fc(out)


def poem_embedder(bert_pooled_features, fc_w, fc_b, *, compute_dtype=None):
    # TODO(synk): the BERT encoder is not reproduced; this takes its pooled (B, 768)
    # output (the module runs BERT under torch.no_grad()) and applies self.fc.
    return linear(bert_pooled_features, fc_w, fc_b, compute_dtype=compute_dtype)


# ---------------------------------------------------------------------------
# PoeticEmbedder.forward
# ---------------------------------------------------------------------------
def poetic_embedder_forward(poem_feats1, mask1, image1, poem_feats2, mask2, image2,
                            params, alpha=0.2, compute_dtype=jnp.bfloat16):
    """Returns (loss, (poem1, image1, poem2, image2)) like the PyTorch module."""
    del mask1, mask2, alpha   # masks feed the skipped BERT; alpha feeds the skipped loss
    B = image1.shape[0]

    # Pool each image batch in place (no raw-image concat / extra HBM pass); batch only
    # the tiny pooled features through one shared fc launch (M = 2*B rows).
    feat1 = image_branch_features(image1, params["w1"], params["w2"], params["w3"],
                                  params["b1"], params["b2"], params["b3"],
                                  compute_dtype=compute_dtype)
    feat2 = image_branch_features(image2, params["w1"], params["w2"], params["w3"],
                                  params["b1"], params["b2"], params["b3"],
                                  compute_dtype=compute_dtype)
    feats = jnp.concatenate([feat1, feat2], axis=0)                   # (2B, 3*Dbk), tiny
    img_emb = linear(feats, params["img_fc_w"], params["img_fc_b"])
    image1_emb, image2_emb = img_emb[:B], img_emb[B:]

    poems = jnp.concatenate([poem_feats1, poem_feats2], axis=0)       # (2B, 768), tiny
    poem_emb = linear(poems, params["poem_fc_w"], params["poem_fc_b"])
    poem1_emb, poem2_emb = poem_emb[:B], poem_emb[B:]

    # TODO(synk): rank_loss(poem1, image1, poem2, image2, alpha) is not defined in the
    # provided spec; returning None for the loss alongside the four embeddings.
    loss = None
    return loss, (poem1_emb, image1_emb, poem2_emb, image2_emb)


# ---------------------------------------------------------------------------
# Pure-JAX references (for sanity checks).
# ---------------------------------------------------------------------------
def _image_embedder_ref(image, w1, w2, w3, b1, b2, b3, fc_w, fc_b):
    B, C, H, W = image.shape
    x = jnp.transpose(image, (0, 2, 3, 1)).reshape(B, H * W, C)

    def branch(w, b):
        y = jnp.maximum(jnp.einsum("bpc,cd->bpd", x, w) + b.reshape(1, 1, -1), 0.0)
        return jnp.mean(y, axis=1)

    feat = jnp.concatenate([branch(w1, b1), branch(w2, b2), branch(w3, b3)], axis=1)
    return feat @ fc_w + fc_b.reshape(1, -1)


if __name__ == "__main__":
    # Small shapes consistent with the module's forward:
    #   image (B, 3, H, W); per-branch feature dim Dbk (2048 in the real model);
    #   fc Linear(3*Dbk, F) (F=512 real); poem path uses BERT pooled (B, 768) features.
    B, C, H, W = 2, 3, 16, 16
    Dbk = 256
    F = 128
    BERT_DIM = 768
    T = 8   # token length (masks only feed the skipped BERT encoder)

    key = jax.random.PRNGKey(0)
    ks = jax.random.split(key, 14)

    image1 = jax.random.normal(ks[0], (B, C, H, W), dtype=jnp.float32)
    image2 = jax.random.normal(ks[1], (B, C, H, W), dtype=jnp.float32)
    poem_feats1 = 0.1 * jax.random.normal(ks[2], (B, BERT_DIM), dtype=jnp.float32)
    poem_feats2 = 0.1 * jax.random.normal(ks[3], (B, BERT_DIM), dtype=jnp.float32)
    mask1 = jnp.ones((B, T), dtype=jnp.float32)
    mask2 = jnp.ones((B, T), dtype=jnp.float32)

    params = dict(
        w1=jax.random.normal(ks[4], (C, Dbk), jnp.float32) * 0.05,
        w2=jax.random.normal(ks[5], (C, Dbk), jnp.float32) * 0.05,
        w3=jax.random.normal(ks[6], (C, Dbk), jnp.float32) * 0.05,
        b1=jax.random.normal(ks[7], (1, Dbk), jnp.float32) * 0.01,
        b2=jax.random.normal(ks[8], (1, Dbk), jnp.float32) * 0.01,
        b3=jax.random.normal(ks[9], (1, Dbk), jnp.float32) * 0.01,
        img_fc_w=jax.random.normal(ks[10], (3 * Dbk, F), jnp.float32) * 0.02,
        img_fc_b=jax.random.normal(ks[11], (1, F), jnp.float32) * 0.01,
        poem_fc_w=jax.random.normal(ks[12], (BERT_DIM, F), jnp.float32) * 0.02,
        poem_fc_b=jax.random.normal(ks[13], (1, F), jnp.float32) * 0.01,
    )

    fwd = jax.jit(poetic_embedder_forward, static_argnames=("alpha", "compute_dtype"))
    loss, (p1, i1, p2, i2) = fwd(poem_feats1, mask1, image1,
                                 poem_feats2, mask2, image2, params)
    p1, i1, p2, i2 = jax.block_until_ready((p1, i1, p2, i2))

    # References
    ref_i1 = _image_embedder_ref(image1, params["w1"], params["w2"], params["w3"],
                                 params["b1"], params["b2"], params["b3"],
                                 params["img_fc_w"], params["img_fc_b"])
    ref_i2 = _image_embedder_ref(image2, params["w1"], params["w2"], params["w3"],
                                 params["b1"], params["b2"], params["b3"],
                                 params["img_fc_w"], params["img_fc_b"])
    ref_p1 = poem_feats1 @ params["poem_fc_w"] + params["poem_fc_b"]
    ref_p2 = poem_feats2 @ params["poem_fc_w"] + params["poem_fc_b"]

    assert loss is None
    assert i1.shape == (B, F) and i2.shape == (B, F), (i1.shape, i2.shape)
    assert p1.shape == (B, F) and p2.shape == (B, F), (p1.shape, p2.shape)
    # Default path: bf16 MXU inputs (in-kernel cast) + f32 accumulation for the image
    # projection; fc stays f32.
    assert jnp.allclose(i1, ref_i1, atol=2e-2, rtol=2e-2), "image1 embedding mismatch"
    assert jnp.allclose(i2, ref_i2, atol=2e-2, rtol=2e-2), "image2 embedding mismatch"
    assert jnp.allclose(p1, ref_p1, atol=2e-3, rtol=2e-3), "poem1 embedding mismatch"
    assert jnp.allclose(p2, ref_p2, atol=2e-3, rtol=2e-3), "poem2 embedding mismatch"

    # f32 structural-exactness check of the image path.
    i1_f32 = image_embedder(image1, params["w1"], params["w2"], params["w3"],
                            params["b1"], params["b2"], params["b3"],
                            params["img_fc_w"], params["img_fc_b"],
                            compute_dtype=jnp.float32)
    i1_f32 = jax.block_until_ready(i1_f32)
    assert jnp.allclose(i1_f32, ref_i1, atol=2e-3, rtol=2e-3), "f32 path mismatch"

    # bf16 fc weight path (halves the fc weight stream; f32 accumulation).
    i1_bf16 = image_embedder(image1, params["w1"], params["w2"], params["w3"],
                             params["b1"], params["b2"], params["b3"],
                             params["img_fc_w"], params["img_fc_b"],
                             compute_dtype=jnp.bfloat16, fc_dtype=jnp.bfloat16)
    i1_bf16 = jax.block_until_ready(i1_bf16)
    assert jnp.allclose(i1_bf16, ref_i1, atol=3e-2, rtol=3e-2), "bf16 fc path mismatch"

    print("KERNEL_OK")
</pallas_src>

<mosaic_0001>
module attributes {stable_mosaic.version = 11 : i64} {
  func.func @_linear_kernel(%arg0: i32, %arg1: memref<4x768xf32, #tpu.memory_space<vmem>>, %arg2: memref<768x128xf32, #tpu.memory_space<vmem>>, %arg3: memref<1x128xf32, #tpu.memory_space<vmem>>, %arg4: memref<4x128xf32, #tpu.memory_space<vmem>>, %arg5: memref<4x128xf32, #tpu.memory_space<vmem>>) attributes {dimension_semantics = [#tpu.dimension_semantics<arbitrary>], iteration_bounds = array<i64: 1>, scalar_prefetch = 0 : i64, scratch_operands = 1 : i64, tpu.core_type = #tpu.core_type<tc>, window_params = [{transform_indices = @transform_0, window_bounds = array<i64: 4, 768>}, {transform_indices = @transform_1, window_bounds = array<i64: 768, 128>}, {pipeline_mode = #tpu.pipeline_mode<synchronous>, transform_indices = @transform_2, window_bounds = array<i64: 1, 128>}, {pipeline_mode = #tpu.pipeline_mode<synchronous>, transform_indices = @transform_3, window_bounds = array<i64: 4, 128>}]} {
    %c0_i32 = arith.constant 0 : i32
    %0 = arith.cmpi eq, %arg0, %c0_i32 : i32
    %1 = arith.extui %0 : i1 to i32
    %c0_i32_0 = arith.constant 0 : i32
    %2 = arith.cmpi ne, %1, %c0_i32_0 : i32
    scf.if %2 {
      %cst_10 = arith.constant 0.000000e+00 : f32
      %12 = vector.broadcast %cst_10 : f32 to vector<4x128xf32>
      %c0_11 = arith.constant 0 : index
      %c0_12 = arith.constant 0 : index
      %13 = vector.load %arg5[%c0_11, %c0_12] : memref<4x128xf32, #tpu.memory_space<vmem>>, vector<4x128xf32>
      tpu.vector_store %arg5[%c0_11, %c0_12], %12 {strides = array<i32>} : memref<4x128xf32, #tpu.memory_space<vmem>>, vector<4x128xf32>,
    } else {
    }
    %c0 = arith.constant 0 : index
    %c0_1 = arith.constant 0 : index
    %3 = vector.load %arg1[%c0, %c0_1] : memref<4x768xf32, #tpu.memory_space<vmem>>, vector<4x768xf32>
    %c0_2 = arith.constant 0 : index
    %c0_3 = arith.constant 0 : index
    %4 = vector.load %arg5[%c0_2, %c0_3] : memref<4x128xf32, #tpu.memory_space<vmem>>, vector<4x128xf32>
    %c0_4 = arith.constant 0 : index
    %c0_5 = arith.constant 0 : index
    %5 = vector.load %arg2[%c0_4, %c0_5] : memref<768x128xf32, #tpu.memory_space<vmem>>, vector<768x128xf32>
    %cst = arith.constant dense<0.000000e+00> : vector<4x128xf32>
    %6 = tpu.matmul %3, %5, %cst {dimension_numbers = #tpu.dot_dimension_numbers<[1], [0], [0], [1], [0, 0, 1, 1], [], []>} : vector<4x768xf32>, vector<768x128xf32>, vector<4x128xf32> -> vector<4x128xf32>
    %7 = arith.addf %4, %6 : vector<4x128xf32>
    %c0_6 = arith.constant 0 : index
    %c0_7 = arith.constant 0 : index
    %8 = vector.load %arg5[%c0_6, %c0_7] : memref<4x128xf32, #tpu.memory_space<vmem>>, vector<4x128xf32>
    tpu.vector_store %arg5[%c0_6, %c0_7], %7 {strides = array<i32>} : memref<4x128xf32, #tpu.memory_space<vmem>>, vector<4x128xf32>,
    %c0_i32_8 = arith.constant 0 : i32
    %9 = arith.cmpi eq, %arg0, %c0_i32_8 : i32
    %10 = arith.extui %9 : i1 to i32
    %c0_i32_9 = arith.constant 0 : i32
    %11 = arith.cmpi ne, %10, %c0_i32_9 : i32
    scf.if %11 {
      %c0_10 = arith.constant 0 : index
      %c0_11 = arith.constant 0 : index
      %12 = vector.load %arg5[%c0_10, %c0_11] : memref<4x128xf32, #tpu.memory_space<vmem>>, vector<4x128xf32>
      %c0_12 = arith.constant 0 : index
      %c0_13 = arith.constant 0 : index
      %13 = vector.load %arg3[%c0_12, %c0_13] : memref<1x128xf32, #tpu.memory_space<vmem>>, vector<1x128xf32>
      %14 = vector.broadcast %13 : vector<1x128xf32> to vector<4x128xf32>
      %15 = arith.addf %12, %14 : vector<4x128xf32>
      %c0_14 = arith.constant 0 : index
      %c0_15 = arith.constant 0 : index
      %16 = vector.load %arg4[%c0_14, %c0_15] : memref<4x128xf32, #tpu.memory_space<vmem>>, vector<4x128xf32>
      tpu.vector_store %arg4[%c0_14, %c0_15], %15 {strides = array<i32>} : memref<4x128xf32, #tpu.memory_space<vmem>>, vector<4x128xf32>,
    } else {
    }
    return
  }
  func.func @transform_0(%arg0: i32) -> (i32, i32) {
    %c0_i32 = arith.constant 0 : i32
    %c0_i32_0 = arith.constant 0 : i32
    return %c0_i32, %arg0 : i32, i32
  }
  func.func @transform_1(%arg0: i32) -> (i32, i32) {
    %c0_i32 = arith.constant 0 : i32
    %c0_i32_0 = arith.constant 0 : i32
    return %arg0, %c0_i32 : i32, i32
  }
  func.func @transform_2(%arg0: i32) -> (i32, i32) {
    %c0_i32 = arith.constant 0 : i32
    %c0_i32_0 = arith.constant 0 : i32
    %c0_i32_1 = arith.constant 0 : i32
    return %c0_i32, %c0_i32_0 : i32, i32
  }
  func.func @transform_3(%arg0: i32) -> (i32, i32) {
    %c0_i32 = arith.constant 0 : i32
    %c0_i32_0 = arith.constant 0 : i32
    %c0_i32_1 = arith.constant 0 : i32
    return %c0_i32, %c0_i32_0 : i32, i32
  }
}

module attributes {stable_mosaic.version = 11 : i64} {
  func.func @_fused_branch_pool_kernel(%arg0: i32, %arg1: i32, %arg2: i32, %arg3: memref<1x3x256xf32, #tpu.memory_space<vmem>>, %arg4: memref<3x768xbf16, #tpu.memory_space<vmem>>, %arg5: memref<1x768xf32, #tpu.memory_space<vmem>>, %arg6: memref<1x1x768xf32, #tpu.memory_space<vmem>>) attributes {dimension_semantics = [#tpu.dimension_semantics<parallel>, #tpu.dimension_semantics<parallel>, #tpu.dimension_semantics<arbitrary>], iteration_bounds = array<i64: 2, 1, 1>, scalar_prefetch = 0 : i64, scratch_operands = 0 : i64, tpu.core_type = #tpu.core_type<tc>, window_params = [{transform_indices = @transform_0, window_bounds = array<i64: 1, 3, 256>}, {transform_indices = @transform_1, window_bounds = array<i64: 3, 768>}, {transform_indices = @transform_2, window_bounds = array<i64: 1, 768>}, {transform_indices = @transform_3, window_bounds = array<i64: 1, 1, 768>}]} {
    %c0_i32 = arith.constant 0 : i32
    %0 = arith.cmpi eq, %arg2, %c0_i32 : i32
    %1 = arith.extui %0 : i1 to i32
    %c0_i32_0 = arith.constant 0 : i32
    %2 = arith.cmpi ne, %1, %c0_i32_0 : i32
    scf.if %2 {
      %cst_17 = arith.constant 0.000000e+00 : f32
      %24 = vector.broadcast %cst_17 : f32 to vector<1x768xf32>
      %c0_18 = arith.constant 0 : index
      %c0_19 = arith.constant 0 : index
      %c0_20 = arith.constant 0 : index
      %25 = vector.load %arg6[%c0_18, %c0_19, %c0_20] : memref<1x1x768xf32, #tpu.memory_space<vmem>>, vector<1x1x768xf32>
      %26 = vector.shape_cast %25 : vector<1x1x768xf32> to vector<1x768xf32>
      %27 = vector.shape_cast %24 : vector<1x768xf32> to vector<1x1x768xf32>
      tpu.vector_store %arg6[%c0_18, %c0_19, %c0_20], %27 {strides = array<i32>} : memref<1x1x768xf32, #tpu.memory_space<vmem>>, vector<1x1x768xf32>,
    } else {
    }
    %c0 = arith.constant 0 : index
    %c0_1 = arith.constant 0 : index
    %c0_2 = arith.constant 0 : index
    %3 = vector.load %arg3[%c0, %c0_1, %c0_2] : memref<1x3x256xf32, #tpu.memory_space<vmem>>, vector<1x3x256xf32>
    %4 = vector.shape_cast %3 : vector<1x3x256xf32> to vector<3x256xf32>
    %5 = arith.truncf %4 : vector<3x256xf32> to vector<3x256xbf16>
    %c0_3 = arith.constant 0 : index
    %c0_4 = arith.constant 0 : index
    %6 = vector.load %arg4[%c0_3, %c0_4] : memref<3x768xbf16, #tpu.memory_space<vmem>>, vector<3x768xbf16>
    %cst = arith.constant dense<0.000000e+00> : vector<256x768xf32>
    %7 = tpu.matmul %5, %6, %cst {dimension_numbers = #tpu.dot_dimension_numbers<[0], [0], [1], [1], [0, 1, 1, 1], [], []>} : vector<3x256xbf16>, vector<3x768xbf16>, vector<256x768xf32> -> vector<256x768xf32>
    %c0_5 = arith.constant 0 : index
    %c0_6 = arith.constant 0 : index
    %8 = vector.load %arg5[%c0_5, %c0_6] : memref<1x768xf32, #tpu.memory_space<vmem>>, vector<1x768xf32>
    %9 = vector.broadcast %8 : vector<1x768xf32> to vector<256x768xf32>
    %10 = arith.addf %7, %9 : vector<256x768xf32>
    %cst_7 = arith.constant 0.000000e+00 : f32
    %11 = vector.broadcast %cst_7 : f32 to vector<256x768xf32>
    %12 = arith.maximumf %10, %11 : vector<256x768xf32>
    %c0_8 = arith.constant 0 : index
    %c0_9 = arith.constant 0 : index
    %c0_10 = arith.constant 0 : index
    %13 = vector.load %arg6[%c0_8, %c0_9, %c0_10] : memref<1x1x768xf32, #tpu.memory_space<vmem>>, vector<1x1x768xf32>
    %14 = vector.shape_cast %13 : vector<1x1x768xf32> to vector<1x768xf32>
    %cst_11 = arith.constant dense<0.000000e+00> : vector<768xf32>
    %15 = vector.multi_reduction <add>, %12, %cst_11 [0] : vector<256x768xf32> to vector<768xf32>
    %16 = vector.shape_cast %15 : vector<768xf32> to vector<1x768xf32>
    %17 = arith.addf %14, %16 : vector<1x768xf32>
    %c0_12 = arith.constant 0 : index
    %c0_13 = arith.constant 0 : index
    %c0_14 = arith.constant 0 : index
    %18 = vector.load %arg6[%c0_12, %c0_13, %c0_14] : memref<1x1x768xf32, #tpu.memory_space<vmem>>, vector<1x1x768xf32>
    %19 = vector.shape_cast %18 : vector<1x1x768xf32> to vector<1x768xf32>
    %20 = vector.shape_cast %17 : vector<1x768xf32> to vector<1x1x768xf32>
    tpu.vector_store %arg6[%c0_12, %c0_13, %c0_14], %20 {strides = array<i32>} : memref<1x1x768xf32, #tpu.memory_space<vmem>>, vector<1x1x768xf32>,
    %c0_i32_15 = arith.constant 0 : i32
    %21 = arith.cmpi eq, %arg2, %c0_i32_15 : i32
    %22 = arith.extui %21 : i1 to i32
    %c0_i32_16 = arith.constant 0 : i32
    %23 = arith.cmpi ne, %22, %c0_i32_16 : i32
    scf.if %23 {
      %c0_17 = arith.constant 0 : index
      %c0_18 = arith.constant 0 : index
      %c0_19 = arith.constant 0 : index
      %24 = vector.load %arg6[%c0_17, %c0_18, %c0_19] : memref<1x1x768xf32, #tpu.memory_space<vmem>>, vector<1x1x768xf32>
      %25 = vector.shape_cast %24 : vector<1x1x768xf32> to vector<1x768xf32>
      %cst_20 = arith.constant 3.906250e-03 : f32
      %26 = vector.broadcast %cst_20 : f32 to vector<1x768xf32>
      %27 = arith.mulf %25, %26 : vector<1x768xf32>
      %c0_21 = arith.constant 0 : index
      %c0_22 = arith.constant 0 : index
      %c0_23 = arith.constant 0 : index
      %28 = vector.load %arg6[%c0_21, %c0_22, %c0_23] : memref<1x1x768xf32, #tpu.memory_space<vmem>>, vector<1x1x768xf32>
      %29 = vector.shape_cast %28 : vector<1x1x768xf32> to vector<1x768xf32>
      %30 = vector.shape_cast %27 : vector<1x768xf32> to vector<1x1x768xf32>
      tpu.vector_store %arg6[%c0_21, %c0_22, %c0_23], %30 {strides = array<i32>} : memref<1x1x768xf32, #tpu.memory_space<vmem>>, vector<1x1x768xf32>,
    } else {
    }
    return
  }
  func.func @transform_0(%arg0: i32, %arg1: i32, %arg2: i32) -> (i32, i32, i32) {
    %c0_i32 = arith.constant 0 : i32
    %c0_i32_0 = arith.constant 0 : i32
    return %arg0, %c0_i32, %arg2 : i32, i32, i32
  }
  func.func @transform_1(%arg0: i32, %arg1: i32, %arg2: i32) -> (i32, i32) {
    %c0_i32 = arith.constant 0 : i32
    %c0_i32_0 = arith.constant 0 : i32
    return %c0_i32, %arg1 : i32, i32
  }
  func.func @transform_2(%arg0: i32, %arg1: i32, %arg2: i32) -> (i32, i32) {
    %c0_i32 = arith.constant 0 : i32
    %c0_i32_0 = arith.constant 0 : i32
    return %c0_i32, %arg1 : i32, i32
  }
  func.func @transform_3(%arg0: i32, %arg1: i32, %arg2: i32) -> (i32, i32, i32) {
    %c0_i32 = arith.constant 0 : i32
    %c0_i32_0 = arith.constant 0 : i32
    return %arg0, %c0_i32, %arg1 : i32, i32, i32
  }
}

module attributes {stable_mosaic.version = 11 : i64} {
  func.func @_linear_kernel(%arg0: i32, %arg1: memref<4x768xf32, #tpu.memory_space<vmem>>, %arg2: memref<768x128xf32, #tpu.memory_space<vmem>>, %arg3: memref<1x128xf32, #tpu.memory_space<vmem>>, %arg4: memref<4x128xf32, #tpu.memory_space<vmem>>, %arg5: memref<4x128xf32, #tpu.memory_space<vmem>>) attributes {dimension_semantics = [#tpu.dimension_semantics<arbitrary>], iteration_bounds = array<i64: 1>, scalar_prefetch = 0 : i64, scratch_operands = 1 : i64, tpu.core_type = #tpu.core_type<tc>, window_params = [{transform_indices = @transform_0, window_bounds = array<i64: 4, 768>}, {transform_indices = @transform_1, window_bounds = array<i64: 768, 128>}, {pipeline_mode = #tpu.pipeline_mode<synchronous>, transform_indices = @transform_2, window_bounds = array<i64: 1, 128>}, {pipeline_mode = #tpu.pipeline_mode<synchronous>, transform_indices = @transform_3, window_bounds = array<i64: 4, 128>}]} {
    %c0_i32 = arith.constant 0 : i32
    %0 = arith.cmpi eq, %arg0, %c0_i32 : i32
    %1 = arith.extui %0 : i1 to i32
    %c0_i32_0 = arith.constant 0 : i32
    %2 = arith.cmpi ne, %1, %c0_i32_0 : i32
    scf.if %2 {
      %cst_10 = arith.constant 0.000000e+00 : f32
      %12 = vector.broadcast %cst_10 : f32 to vector<4x128xf32>
      %c0_11 = arith.constant 0 : index
      %c0_12 = arith.constant 0 : index
      %13 = vector.load %arg5[%c0_11, %c0_12] : memref<4x128xf32, #tpu.memory_space<vmem>>, vector<4x128xf32>
      tpu.vector_store %arg5[%c0_11, %c0_12], %12 {strides = array<i32>} : memref<4x128xf32, #tpu.memory_space<vmem>>, vector<4x128xf32>,
    } else {
    }
    %c0 = arith.constant 0 : index
    %c0_1 = arith.constant 0 : index
    %3 = vector.load %arg1[%c0, %c0_1] : memref<4x768xf32, #tpu.memory_space<vmem>>, vector<4x768xf32>
    %c0_2 = arith.constant 0 : index
    %c0_3 = arith.constant 0 : index
    %4 = vector.load %arg5[%c0_2, %c0_3] : memref<4x128xf32, #tpu.memory_space<vmem>>, vector<4x128xf32>
    %c0_4 = arith.constant 0 : index
    %c0_5 = arith.constant 0 : index
    %5 = vector.load %arg2[%c0_4, %c0_5] : memref<768x128xf32, #tpu.memory_space<vmem>>, vector<768x128xf32>
    %cst = arith.constant dense<0.000000e+00> : vector<4x128xf32>
    %6 = tpu.matmul %3, %5, %cst {dimension_numbers = #tpu.dot_dimension_numbers<[1], [0], [0], [1], [0, 0, 1, 1], [], []>} : vector<4x768xf32>, vector<768x128xf32>, vector<4x128xf32> -> vector<4x128xf32>
    %7 = arith.addf %4, %6 : vector<4x128xf32>
    %c0_6 = arith.constant 0 : index
    %c0_7 = arith.constant 0 : index
    %8 = vector.load %arg5[%c0_6, %c0_7] : memref<4x128xf32, #tpu.memory_space<vmem>>, vector<4x128xf32>
    tpu.vector_store %arg5[%c0_6, %c0_7], %7 {strides = array<i32>} : memref<4x128xf32, #tpu.memory_space<vmem>>, vector<4x128xf32>,
    %c0_i32_8 = arith.constant 0 : i32
    %9 = arith.cmpi eq, %arg0, %c0_i32_8 : i32
    %10 = arith.extui %9 : i1 to i32
    %c0_i32_9 = arith.constant 0 : i32
    %11 = arith.cmpi ne, %10, %c0_i32_9 : i32
    scf.if %11 {
      %c0_10 = arith.constant 0 : index
      %c0_11 = arith.constant 0 : index
      %12 = vector.load %arg5[%c0_10, %c0_11] : memref<4x128xf32, #tpu.memory_space<vmem>>, vector<4x128xf32>
      %c0_12 = arith.constant 0 : index
      %c0_13 = arith.constant 0 : index
      %13 = vector.load %arg3[%c0_12, %c0_13] : memref<1x128xf32, #tpu.memory_space<vmem>>, vector<1x128xf32>
      %14 = vector.broadcast %13 : vector<1x128xf32> to vector<4x128xf32>
      %15 = arith.addf %12, %14 : vector<4x128xf32>
      %c0_14 = arith.constant 0 : index
      %c0_15 = arith.constant 0 : index
      %16 = vector.load %arg4[%c0_14, %c0_15] : memref<4x128xf32, #tpu.memory_space<vmem>>, vector<4x128xf32>
      tpu.vector_store %arg4[%c0_14, %c0_15], %15 {strides = array<i32>} : memref<4x128xf32, #tpu.memory_space<vmem>>, vector<4x128xf32>,
    } else {
    }
    return
  }
  func.func @transform_0(%arg0: i32) -> (i32, i32) {
    %c0_i32 = arith.constant 0 : i32
    %c0_i32_0 = arith.constant 0 : i32
    return %c0_i32, %arg0 : i32, i32
  }
  func.func @transform_1(%arg0: i32) -> (i32, i32) {
    %c0_i32 = arith.constant 0 : i32
    %c0_i32_0 = arith.constant 0 : i32
    return %arg0, %c0_i32 : i32, i32
  }
  func.func @transform_2(%arg0: i32) -> (i32, i32) {
    %c0_i32 = arith.constant 0 : i32
    %c0_i32_0 = arith.constant 0 : i32
    %c0_i32_1 = arith.constant 0 : i32
    return %c0_i32, %c0_i32_0 : i32, i32
  }
  func.func @transform_3(%arg0: i32) -> (i32, i32) {
    %c0_i32 = arith.constant 0 : i32
    %c0_i32_0 = arith.constant 0 : i32
    %c0_i32_1 = arith.constant 0 : i32
    return %c0_i32, %c0_i32_0 : i32, i32
  }
}

</mosaic_0001>

<bundles_post_ra>
// kernel: poetic_embedder_forward.6
= control target key start
LH: loop header
LB: loop body
LE: loop exit
PB: predicated region body
PF: predicated region fallthrough
CT: control target
= control target key end

     0   :  { %8 = vsyncpa [#allocation4], 0  ;;  %s408_s0 = inlined_call_operand.vmem [shape: f32[4,768], index: 0, kind: input, shape index: {}]   ;;  %s409_s1 = inlined_call_operand.hbm [shape: f32[768,128], index: 1, kind: input, shape index: {}]   ;;  %s410_s2 = inlined_call_operand.hbm [shape: f32[1,128], index: 2, kind: input, shape index: {}]   ;;  %s411_s3 = inlined_call_operand.vmem [shape: f32[4,128], index: 3, kind: output, shape index: {}]  }
   0x1   :  { %s16_s14 = sshll.u32 %s409_s1, 4  ;;  %s17_s14 = int_to_ptr.hbm [resolvable:$true] %s16_s14 }
   0x2   :  { %9 = vsyncpa [#allocation6], 0  ;;  %s365_s15 = smov [#allocation3]   ;;  %s30_s19 = sshll.u32 %s410_s2, 4  ;;  %s31_s19 = int_to_ptr.hbm [resolvable:$true] %s30_s19 }
   0x3   :  { %s18_s16 = sshll.u32 %s365_s15, 4  ;;  %s366_s20 = smov 128   ;;  %s19_s16 = int_to_ptr.vmem [resolvable:$true] %s18_s16 }
   0x4   :  { %s367_s21 = smov 8   ;;  %s368_s22 = smov [#allocation5]  }
   0x5   :  { %24 = dma.hbm_to_vmem [thread:$0]  %s17_s14, 12288, %s19_s16, [#allocation4], %s366_s20, %s366_s20, %s367_s21  }
   0x6   :  { %s32_s23 = sshll.u32 %s368_s22, 4  ;;  %s33_s23 = int_to_ptr.vmem [resolvable:$true] %s32_s23 }
   0x7   :  { %35 = dma.hbm_to_vmem [thread:$0]  %s31_s19, 16, %s33_s23, [#allocation6]  }
   0x8   :  { %361 = dma.done.wait [#allocation4], 12288  }
   0x9   :  { %362 = vsyncadd [#allocation4], 4294955008 }
   0xa   :  { %363 = dma.done.wait [#allocation6], 16  }
   0xb   :  { %364 = vsyncadd [#allocation6], 4294967280  ;;  %v68_v0 = vld [vmem:[#allocation3 + $0x78] sm:$0xff]  ;;  %v67_v1 = vld [vmem:[#allocation3 + $0x70] sm:$0xff] }
   0xc   :  { %v84_v2 = vld [vmem:[#allocation3 + $0xf8] sm:$0xff]  ;;  %169 = vmatpush.msra.mxu0 %v68_v0  ;;  %v83_v3 = vld [vmem:[#allocation3 + $0xf0] sm:$0xff]  ;;  %v66_v4 = vld [vmem:[#allocation3 + $0x68] sm:$0xff] }
   0xd   :  { %189 = vmatpush.msra.mxu1 %v84_v2  ;;  %v82_v5 = vld [vmem:[#allocation3 + $0xe8] sm:$0xff]  ;;  %v65_v6 = vld [vmem:[#allocation3 + $0x60] sm:$0xff]  ;;  %v64_v8 = vld [vmem:[#allocation3 + $0x58] sm:$0xff] }
   0xe   :  { %170 = vmatpush.msra.mxu0 %v67_v1  ;;  %v81_v7 = vld [vmem:[#allocation3 + $0xe0] sm:$0xff]  ;;  %v80_v9 = vld [vmem:[#allocation3 + $0xd8] sm:$0xff]  ;;  %v99_v11 = vld [vmem:[#allocation3 + $0x170] sm:$0xff] }
   0xf   :  { %190 = vmatpush.msra.mxu1 %v83_v3  ;;  %v100_v10 = vld [vmem:[#allocation3 + $0x178] sm:$0xff]  ;;  %v63_v13 = vld [vmem:[#allocation3 + $0x50] sm:$0xff]  ;;  %v98_v15 = vld [vmem:[#allocation3 + $0x168] sm:$0xff] }
  0x10   :  { %171 = vmatpush.msra.mxu0 %v66_v4  ;;  %v116_v12 = vld [vmem:[#allocation3 + $0x1f8] sm:$0xff]  ;;  %v79_v14 = vld [vmem:[#allocation3 + $0xd0] sm:$0xff]  ;;  %209 = vmatpush.msra.mxu2 %v100_v10  ;;  %v62_v17 = vld [vmem:[#allocation3 + $0x48] sm:$0xff] }
  0x11   :  { %191 = vmatpush.msra.mxu1 %v82_v5  ;;  %229 = vmatpush.msra.mxu3 %v116_v12  ;;  %v115_v16 = vld [vmem:[#allocation3 + $0x1f0] sm:$0xff]  ;;  %v78_v18 = vld [vmem:[#allocation3 + $0xc8] sm:$0xff]  ;;  %v97_v20 = vld [vmem:[#allocation3 + $0x160] sm:$0xff] }
  0x12   :  { %172 = vmatpush.msra.mxu0 %v65_v6  ;;  %210 = vmatpush.msra.mxu2 %v99_v11  ;;  %v114_v19 = vld [vmem:[#allocation3 + $0x1e8] sm:$0xff]  ;;  %v113_v21 = vld [vmem:[#allocation3 + $0x1e0] sm:$0xff]  ;;  %v96_v24 = vld [vmem:[#allocation3 + $0x158] sm:$0xff] }
  0x13   :  { %192 = vmatpush.msra.mxu1 %v81_v7  ;;  %230 = vmatpush.msra.mxu3 %v115_v16  ;;  %v61_v22 = vld [vmem:[#allocation3 + $0x40] sm:$0xff]  ;;  %v112_v25 = vld [vmem:[#allocation3 + $0x1d8] sm:$0xff]  ;;  %v95_v28 = vld [vmem:[#allocation3 + $0x150] sm:$0xff] }
  0x14   :  { %173 = vmatpush.msra.mxu0 %v64_v8  ;;  %v77_v23 = vld [vmem:[#allocation3 + $0xc0] sm:$0xff]  ;;  %211 = vmatpush.msra.mxu2 %v98_v15  ;;  %v60_v26 = vld [vmem:[#allocation3 + $0x38] sm:$0xff]  ;;  %v111_v29 = vld [vmem:[#allocation3 + $0x1d0] sm:$0xff] }
  0x15   :  { %193 = vmatpush.msra.mxu1 %v80_v9  ;;  %231 = vmatpush.msra.mxu3 %v114_v19  ;;  %v76_v27 = vld [vmem:[#allocation3 + $0xb8] sm:$0xff]  ;;  %v59_v30 = vld [vmem:[#allocation3 + $0x30] sm:$0xff]  ;;  %v94_v32 = vld [vmem:[#allocation3 + $0x148] sm:$0xff] }
  0x16   :  { %174 = vmatpush.msra.mxu0 %v63_v13  ;;  %212 = vmatpush.msra.mxu2 %v97_v20  ;;  %v75_v31 = vld [vmem:[#allocation3 + $0xb0] sm:$0xff]  ;;  %v110_v33 = vld [vmem:[#allocation3 + $0x1c8] sm:$0xff]  ;;  %v93_v36 = vld [vmem:[#allocation3 + $0x140] sm:$0xff] }
  0x17   :  { %194 = vmatpush.msra.mxu1 %v79_v14  ;;  %232 = vmatpush.msra.mxu3 %v113_v21  ;;  %v58_v34 = vld [vmem:[#allocation3 + $0x28] sm:$0xff]  ;;  %v109_v37 = vld [vmem:[#allocation3 + $0x1c0] sm:$0xff]  ;;  %v92_v40 = vld [vmem:[#allocation3 + $0x138] sm:$0xff] }
  0x18   :  { %175 = vmatpush.msra.mxu0 %v62_v17  ;;  %213 = vmatpush.msra.mxu2 %v96_v24  ;;  %v74_v35 = vld [vmem:[#allocation3 + $0xa8] sm:$0xff]  ;;  %v57_v38 = vld [vmem:[#allocation3 + $0x20] sm:$0xff]  ;;  %v108_v41 = vld [vmem:[#allocation3 + $0x1b8] sm:$0xff] }
  0x19   :  { %195 = vmatpush.msra.mxu1 %v78_v18  ;;  %233 = vmatpush.msra.mxu3 %v112_v25  ;;  %v73_v39 = vld [vmem:[#allocation3 + $0xa0] sm:$0xff]  ;;  %v56_v42 = vld [vmem:[#allocation3 + $0x18] sm:$0xff]  ;;  %v91_v44 = vld [vmem:[#allocation3 + $0x130] sm:$0xff] }
  0x1a   :  { %176 = vmatpush.msra.mxu0 %v61_v22  ;;  %214 = vmatpush.msra.mxu2 %v95_v28  ;;  %v72_v43 = vld [vmem:[#allocation3 + $0x98] sm:$0xff]  ;;  %v107_v45 = vld [vmem:[#allocation3 + $0x1b0] sm:$0xff]  ;;  %v90_v48 = vld [vmem:[#allocation3 + $0x128] sm:$0xff] }
  0x1b   :  { %196 = vmatpush.msra.mxu1 %v77_v23  ;;  %234 = vmatpush.msra.mxu3 %v111_v29  ;;  %v55_v46 = vld [vmem:[#allocation3 + $0x10] sm:$0xff]  ;;  %v106_v49 = vld [vmem:[#allocation3 + $0x1a8] sm:$0xff]  ;;  %v89_v52 = vld [vmem:[#allocation3 + $0x120] sm:$0xff] }
  0x1c   :  { %177 = vmatpush.msra.mxu0 %v60_v26  ;;  %215 = vmatpush.msra.mxu2 %v94_v32  ;;  %v71_v47 = vld [vmem:[#allocation3 + $0x90] sm:$0xff]  ;;  %v54_v50 = vld [vmem:[#allocation3 + $0x8] sm:$0xff]  ;;  %v105_v53 = vld [vmem:[#allocation3 + $0x1a0] sm:$0xff] }
  0x1d   :  { %197 = vmatpush.msra.mxu1 %v76_v27  ;;  %235 = vmatpush.msra.mxu3 %v110_v33  ;;  %v70_v51 = vld [vmem:[#allocation3 + $0x88] sm:$0xff]  ;;  %v50_v54 = vld [vmem:[%s408_s0 + $0x8] sm:$0xff]  ;;  %v49_v59 = vld [vmem:[%s408_s0] sm:$0xff] }
  0x1e   :  { %178 = vmatpush.msra.mxu0 %v59_v30  ;;  %216 = vmatpush.msra.mxu2 %v93_v36  ;;  %v53_v55 = vld [vmem:[#allocation3] sm:$0xff]  ;;  %154 = vst [vmem:[#allocation1 + $0x10] ss:$2 sm:$0xff] %v50_v54  ;;  %v132_v57 = vld [vmem:[#allocation3 + $0x278] sm:$0xff]  ;;  %v131_v62 = vld [vmem:[#allocation3 + $0x270] sm:$0xff] }
  0x1f   :  { %198 = vmatpush.msra.mxu1 %v75_v31  ;;  %236 = vmatpush.msra.mxu3 %v109_v37  ;;  %v69_v56 = vld [vmem:[#allocation3 + $0x80] sm:$0xff]  ;;  %v148_v58 = vld [vmem:[#allocation3 + $0x2f8] sm:$0xff]  ;;  %152 = vst [vmem:[#allocation1] ss:$2 sm:$0xff] %v49_v59  ;;  %v147_v63 = vld [vmem:[#allocation3 + $0x2f0] sm:$0xff] }
  0x20   :  { %179 = vmatpush.msra.mxu0 %v58_v34  ;;  %217 = vmatpush.msra.mxu2 %v92_v40  ;;  %v88_v60 = vld [vmem:[#allocation3 + $0x118] sm:$0xff]  ;;  %v87_v0 = vld [vmem:[#allocation3 + $0x110] sm:$0xff]  ;;  %v51_v2 = vld [vmem:[%s408_s0 + $0x10] sm:$0xff] }
  0x21   :  { %199 = vmatpush.msra.mxu1 %v74_v35  ;;  %237 = vmatpush.msra.mxu3 %v108_v41  ;;  %v104_v61 = vld [vmem:[#allocation3 + $0x198] sm:$0xff]  ;;  %v103_v1 = vld [vmem:[#allocation3 + $0x190] sm:$0xff]  ;;  %v130_v3 = vld [vmem:[#allocation3 + $0x268] sm:$0xff]  ;;  %156 = vst [vmem:[#allocation1 + $0x20] ss:$2 sm:$0xff] %v51_v2  ;;  %v369_v41 = vmov 0.0  }
  0x22   :  { %180 = vmatpush.msra.mxu0 %v57_v38  ;;  %218 = vmatpush.msra.mxu2 %v91_v44  ;;  %v146_v4 = vld [vmem:[#allocation3 + $0x2e8] sm:$0xff]  ;;  %v129_v7 = vld [vmem:[#allocation3 + $0x260] sm:$0xff]  ;;  %v128_v11 = vld [vmem:[#allocation3 + $0x258] sm:$0xff]  ;;  %48 = vst [vmem:[#allocation2] sm:$0xf] %v369_v41 }
  0x23   :  { %200 = vmatpush.msra.mxu1 %v73_v39  ;;  %238 = vmatpush.msra.mxu3 %v107_v45  ;;  %v86_v5 = vld [vmem:[#allocation3 + $0x108] sm:$0xff]  ;;  %v145_v8 = vld [vmem:[#allocation3 + $0x2e0] sm:$0xff]  ;;  %v144_v12 = vld [vmem:[#allocation3 + $0x2d8] sm:$0xff] }
  0x24   :  { %181 = vmatpush.msra.mxu0 %v56_v42  ;;  %219 = vmatpush.msra.mxu2 %v90_v48  ;;  %v102_v6 = vld [vmem:[#allocation3 + $0x188] sm:$0xff]  ;;  %v85_v9 = vld [vmem:[#allocation3 + $0x100] sm:$0xff]  ;;  %v127_v15 = vld [vmem:[#allocation3 + $0x250] sm:$0xff] }
  0x25   :  { %201 = vmatpush.msra.mxu1 %v72_v43  ;;  %239 = vmatpush.msra.mxu3 %v106_v49  ;;  %v101_v10 = vld [vmem:[#allocation3 + $0x180] sm:$0xff]  ;;  %v160_v14 = vld.sshfl [vmem:[#allocation1 + $0x18] sm:$0xff pattern:$0x75316420]  ;;  %v124_v23 = vld [vmem:[#allocation3 + $0x238] sm:$0xff] }
  0x26   :  { %182 = vmatpush.msra.mxu0 %v55_v46  ;;  %220 = vmatpush.msra.mxu2 %v89_v52  ;;  %v159_v13 = vld.sshfl [vmem:[#allocation1 + $0x10] sm:$0xff pattern:$0x75316420]  ;;  %v143_v16 = vld [vmem:[#allocation3 + $0x2d0] sm:$0xff]  ;;  %v140_v24 = vld [vmem:[#allocation3 + $0x2b8] sm:$0xff] }
  0x27   :  { %202 = vmatpush.msra.mxu1 %v71_v47  ;;  %240 = vmatpush.msra.mxu3 %v105_v53  ;;  %v157_v17 = vld.sshfl [vmem:[#allocation1] sm:$0xff pattern:$0x75316420]  ;;  %v158_v18 = vld.sshfl [vmem:[#allocation1 + $0x8] sm:$0xff pattern:$0x75316420] }
  0x28   :  { %183 = vmatpush.msra.mxu0 %v54_v50  ;;  %221 = vmatpush.msra.mxu2 %v88_v60  ;;  %v126_v19 = vld [vmem:[#allocation3 + $0x248] sm:$0xff]  ;;  %v125_v21 = vld [vmem:[#allocation3 + $0x240] sm:$0xff]  ;;  %v123_v25 = vld [vmem:[#allocation3 + $0x230] sm:$0xff] }
  0x29   :  { %203 = vmatpush.msra.mxu1 %v70_v51  ;;  %241 = vmatpush.msra.mxu3 %v104_v61  ;;  %v142_v20 = vld [vmem:[#allocation3 + $0x2c8] sm:$0xff]  ;;  %v141_v22 = vld [vmem:[#allocation3 + $0x2c0] sm:$0xff]  ;;  %v139_v26 = vld [vmem:[#allocation3 + $0x2b0] sm:$0xff] }
  0x2a   :  { %184 = vmatpush.msra.mxu0 %v53_v55  ;;  %222 = vmatpush.msra.mxu2 %v87_v0  ;;  %v122_v27 = vld [vmem:[#allocation3 + $0x228] sm:$0xff]  ;;  %v121_v29 = vld [vmem:[#allocation3 + $0x220] sm:$0xff]  ;;  %v120_v31 = vld [vmem:[#allocation3 + $0x218] sm:$0xff] }
  0x2b   :  { %204 = vmatpush.msra.mxu1 %v69_v56  ;;  %242 = vmatpush.msra.mxu3 %v103_v1  ;;  %v138_v28 = vld [vmem:[#allocation3 + $0x2a8] sm:$0xff]  ;;  %v137_v30 = vld [vmem:[#allocation3 + $0x2a0] sm:$0xff]  ;;  %v136_v32 = vld [vmem:[#allocation3 + $0x298] sm:$0xff] }
  0x2c   :  { %249 = vmatpush.msrb.mxu0 %v132_v57  ;;  %223 = vmatpush.msra.mxu2 %v86_v5  ;;  %v119_v33 = vld [vmem:[#allocation3 + $0x210] sm:$0xff]  ;;  %v118_v35 = vld [vmem:[#allocation3 + $0x208] sm:$0xff]  ;;  %v117_v37 = vld [vmem:[#allocation3 + $0x200] sm:$0xff] }
  0x2d   :  { %269 = vmatpush.msrb.mxu1 %v148_v58  ;;  %243 = vmatpush.msra.mxu3 %v102_v6  ;;  %v135_v34 = vld [vmem:[#allocation3 + $0x290] sm:$0xff]  ;;  %v134_v36 = vld [vmem:[#allocation3 + $0x288] sm:$0xff]  ;;  %v133_v38 = vld [vmem:[#allocation3 + $0x280] sm:$0xff] }
  0x2e   :  { %250 = vmatpush.msrb.mxu0 %v131_v62  ;;  %224 = vmatpush.msra.mxu2 %v85_v9  ;;  %v161_v39 = vld.sshfl [vmem:[#allocation1 + $0x20] sm:$0xff pattern:$0x75316420]  ;;  %v162_v40 = vld.sshfl [vmem:[#allocation1 + $0x28] sm:$0xff pattern:$0x75316420] }
  0x2f   :  { %270 = vmatpush.msrb.mxu1 %v147_v63  ;;  %244 = vmatpush.msra.mxu3 %v101_v10  ;;  %v52_v52 = vld [vmem:[#allocation2] sm:$0xf]  ;;  %v312_v55 = vld [vmem:[#allocation5] ss:$0 sm:$0xff] }
  0x30   :  { %251 = vmatpush.msrb.mxu0 %v130_v3  ;;  %225 = vmatmul.f32.vlgmr.msra.gmra.mxu2 %v159_v13 }
  0x31   :  { %271 = vmatpush.msrb.mxu1 %v146_v4  ;;  %245 = vmatmul.f32.vlgmr.msra.gmra.mxu3 %v160_v14 }
  0x32   :  { %252 = vmatpush.msrb.mxu0 %v129_v7  ;;  %205 = vmatmul.f32.vlgmr.msra.gmra.mxu1 %v158_v18 }
  0x33   :  { %272 = vmatpush.msrb.mxu1 %v145_v8  ;;  %185 = vmatmul.f32.vlgmr.msra.gmra.mxu0 %v157_v17 }
  0x34   :  { %253 = vmatpush.msrb.mxu0 %v128_v11 }
  0x35   :  { %273 = vmatpush.msrb.mxu1 %v144_v12 }
  0x36   :  { %254 = vmatpush.msrb.mxu0 %v127_v15 }
  0x37   :  { %274 = vmatpush.msrb.mxu1 %v143_v16 }
  0x38   :  { %255 = vmatpush.msrb.mxu0 %v126_v19 }
  0x39   :  { %275 = vmatpush.msrb.mxu1 %v142_v20 }
  0x3a   :  { %256 = vmatpush.msrb.mxu0 %v125_v21 }
  0x3b   :  { %276 = vmatpush.msrb.mxu1 %v141_v22 }
  0x3c   :  { %257 = vmatpush.msrb.mxu0 %v124_v23 }
  0x3d   :  { %277 = vmatpush.msrb.mxu1 %v140_v24 }
  0x3e   :  { %258 = vmatpush.msrb.mxu0 %v123_v25 }
  0x3f   :  { %278 = vmatpush.msrb.mxu1 %v139_v26 }
  0x40   :  { %259 = vmatpush.msrb.mxu0 %v122_v27 }
  0x41   :  { %279 = vmatpush.msrb.mxu1 %v138_v28 }
  0x42   :  { %260 = vmatpush.msrb.mxu0 %v121_v29 }
  0x43   :  { %280 = vmatpush.msrb.mxu1 %v137_v30 }
  0x44   :  { %261 = vmatpush.msrb.mxu0 %v120_v31 }
  0x45   :  { %281 = vmatpush.msrb.mxu1 %v136_v32 }
  0x46   :  { %262 = vmatpush.msrb.mxu0 %v119_v33 }
  0x47   :  { %282 = vmatpush.msrb.mxu1 %v135_v34 }
  0x48   :  { %263 = vmatpush.msrb.mxu0 %v118_v35 }
  0x49   :  { %283 = vmatpush.msrb.mxu1 %v134_v36 }
  0x4a   :  { %264 = vmatpush.msrb.mxu0 %v117_v37 }
  0x4b   :  { %284 = vmatpush.msrb.mxu1 %v133_v38  ;;  %265 = vmatmul.f32.vlgmr.msrb.gmra.mxu0 %v161_v39 }
  0x4c   :  { %285 = vmatmul.f32.vlgmr.msrb.gmra.mxu1 %v162_v40 }
  0xaf   :  { %v206_v43 = vpop.f32.mrf.mxu1 }
  0xb0   :  { %v186_v42 = vpop.f32.mrf.mxu0 }
  0xb1   :  { %v207_v44 = vadd.f32 %v206_v43, %v186_v42 }
  0xb3   :  { %v226_v45 = vpop.f32.mrf.mxu2 }
  0xb4   :  { %v227_v46 = vadd.f32 %v226_v45, %v207_v44  ;;  %v246_v47 = vpop.f32.mrf.mxu3 }
  0xb6   :  { %v247_v48 = vadd.f32 %v246_v47, %v227_v46 }
  0xc8   :  { %v266_v49 = vpop.f32.mrf.mxu0 }
  0xc9   :  { %v286_v50 = vpop.f32.mrf.mxu1  ;;  %v267_v51 = vadd.f32 %v266_v49, %v247_v48 }
  0xcb   :  { %v287_v53 = vadd.f32 %v286_v50, %v267_v51 }
  0xcd   :  { %v289_v54 = vadd.f32 %v287_v53, %v52_v52 }
  0xcf   :  { %290 = vst [vmem:[#allocation2] sm:$0xf] %v289_v54 }
  0xd6   :  { %v294_v56 = vld [vmem:[#allocation2] sm:$0xf] }
  0xd7   :  { %v299_v57 = vadd.f32 %v312_v55, %v294_v56 }
  0xd9   :  { %300 = vst [vmem:[%s411_s3] sm:$0xf] %v299_v57 }
  0xda   :  { %305 = vsyncpa [#allocation4], 1 }
  0xdb   :  { %306 = vsyncpa [#allocation6], 1 }

// kernel: poetic_embedder_forward.7
= control target key start
LH: loop header
LB: loop body
LE: loop exit
PB: predicated region body
PF: predicated region fallthrough
CT: control target
= control target key end

     0   :  { %s601_s1 = inlined_call_operand.vmem [shape: f32[768,128], index: 1, kind: input, shape index: {}]   ;;  %s602_s0 = inlined_call_operand.vmem [shape: f32[4,768], index: 0, kind: input, shape index: {}]   ;;  %s603_s2 = inlined_call_operand.vmem [shape: f32[1,128], index: 2, kind: input, shape index: {}]   ;;  %s604_s3 = inlined_call_operand.vmem [shape: f32[4,128], index: 3, kind: output, shape index: {}]  }
   0x1   :  { %v38_v0 = vld [vmem:[%s601_s1 + $0x78] sm:$0xff]  ;;  %v37_v1 = vld [vmem:[%s601_s1 + $0x70] sm:$0xff]  ;;  %v36_v4 = vld [vmem:[%s601_s1 + $0x68] sm:$0xff] }
   0x2   :  { %v54_v2 = vld [vmem:[%s601_s1 + $0xf8] sm:$0xff]  ;;  %139 = vmatpush.msra.mxu0 %v38_v0  ;;  %v53_v3 = vld [vmem:[%s601_s1 + $0xf0] sm:$0xff]  ;;  %v52_v5 = vld [vmem:[%s601_s1 + $0xe8] sm:$0xff] }
   0x3   :  { %159 = vmatpush.msra.mxu1 %v54_v2  ;;  %v35_v6 = vld [vmem:[%s601_s1 + $0x60] sm:$0xff]  ;;  %v34_v8 = vld [vmem:[%s601_s1 + $0x58] sm:$0xff]  ;;  %v69_v11 = vld [vmem:[%s601_s1 + $0x170] sm:$0xff] }
   0x4   :  { %140 = vmatpush.msra.mxu0 %v37_v1  ;;  %v51_v7 = vld [vmem:[%s601_s1 + $0xe0] sm:$0xff]  ;;  %v50_v9 = vld [vmem:[%s601_s1 + $0xd8] sm:$0xff]  ;;  %v33_v13 = vld [vmem:[%s601_s1 + $0x50] sm:$0xff] }
   0x5   :  { %160 = vmatpush.msra.mxu1 %v53_v3  ;;  %v70_v10 = vld [vmem:[%s601_s1 + $0x178] sm:$0xff]  ;;  %v49_v14 = vld [vmem:[%s601_s1 + $0xd0] sm:$0xff]  ;;  %v68_v15 = vld [vmem:[%s601_s1 + $0x168] sm:$0xff] }
   0x6   :  { %141 = vmatpush.msra.mxu0 %v36_v4  ;;  %v86_v12 = vld [vmem:[%s601_s1 + $0x1f8] sm:$0xff]  ;;  %179 = vmatpush.msra.mxu2 %v70_v10  ;;  %v85_v16 = vld [vmem:[%s601_s1 + $0x1f0] sm:$0xff]  ;;  %v32_v17 = vld [vmem:[%s601_s1 + $0x48] sm:$0xff] }
   0x7   :  { %161 = vmatpush.msra.mxu1 %v52_v5  ;;  %199 = vmatpush.msra.mxu3 %v86_v12  ;;  %v48_v18 = vld [vmem:[%s601_s1 + $0xc8] sm:$0xff]  ;;  %v67_v20 = vld [vmem:[%s601_s1 + $0x160] sm:$0xff]  ;;  %v66_v24 = vld [vmem:[%s601_s1 + $0x158] sm:$0xff] }
   0x8   :  { %142 = vmatpush.msra.mxu0 %v35_v6  ;;  %180 = vmatpush.msra.mxu2 %v69_v11  ;;  %v84_v19 = vld [vmem:[%s601_s1 + $0x1e8] sm:$0xff]  ;;  %v83_v21 = vld [vmem:[%s601_s1 + $0x1e0] sm:$0xff]  ;;  %v82_v25 = vld [vmem:[%s601_s1 + $0x1d8] sm:$0xff] }
   0x9   :  { %162 = vmatpush.msra.mxu1 %v51_v7  ;;  %200 = vmatpush.msra.mxu3 %v85_v16  ;;  %v31_v22 = vld [vmem:[%s601_s1 + $0x40] sm:$0xff]  ;;  %v30_v26 = vld [vmem:[%s601_s1 + $0x38] sm:$0xff]  ;;  %v65_v28 = vld [vmem:[%s601_s1 + $0x150] sm:$0xff] }
   0xa   :  { %143 = vmatpush.msra.mxu0 %v34_v8  ;;  %v47_v23 = vld [vmem:[%s601_s1 + $0xc0] sm:$0xff]  ;;  %181 = vmatpush.msra.mxu2 %v68_v15  ;;  %v46_v27 = vld [vmem:[%s601_s1 + $0xb8] sm:$0xff]  ;;  %v81_v29 = vld [vmem:[%s601_s1 + $0x1d0] sm:$0xff] }
   0xb   :  { %163 = vmatpush.msra.mxu1 %v50_v9  ;;  %201 = vmatpush.msra.mxu3 %v84_v19  ;;  %v29_v30 = vld [vmem:[%s601_s1 + $0x30] sm:$0xff]  ;;  %v64_v32 = vld [vmem:[%s601_s1 + $0x148] sm:$0xff]  ;;  %v63_v36 = vld [vmem:[%s601_s1 + $0x140] sm:$0xff] }
   0xc   :  { %144 = vmatpush.msra.mxu0 %v33_v13  ;;  %182 = vmatpush.msra.mxu2 %v67_v20  ;;  %v45_v31 = vld [vmem:[%s601_s1 + $0xb0] sm:$0xff]  ;;  %v80_v33 = vld [vmem:[%s601_s1 + $0x1c8] sm:$0xff]  ;;  %v79_v37 = vld [vmem:[%s601_s1 + $0x1c0] sm:$0xff] }
   0xd   :  { %164 = vmatpush.msra.mxu1 %v49_v14  ;;  %202 = vmatpush.msra.mxu3 %v83_v21  ;;  %v28_v34 = vld [vmem:[%s601_s1 + $0x28] sm:$0xff]  ;;  %v27_v38 = vld [vmem:[%s601_s1 + $0x20] sm:$0xff]  ;;  %v62_v40 = vld [vmem:[%s601_s1 + $0x138] sm:$0xff] }
   0xe   :  { %145 = vmatpush.msra.mxu0 %v32_v17  ;;  %183 = vmatpush.msra.mxu2 %v66_v24  ;;  %v44_v35 = vld [vmem:[%s601_s1 + $0xa8] sm:$0xff]  ;;  %v43_v39 = vld [vmem:[%s601_s1 + $0xa0] sm:$0xff]  ;;  %v78_v41 = vld [vmem:[%s601_s1 + $0x1b8] sm:$0xff] }
   0xf   :  { %165 = vmatpush.msra.mxu1 %v48_v18  ;;  %203 = vmatpush.msra.mxu3 %v82_v25  ;;  %v26_v42 = vld [vmem:[%s601_s1 + $0x18] sm:$0xff]  ;;  %v61_v44 = vld [vmem:[%s601_s1 + $0x130] sm:$0xff]  ;;  %v60_v48 = vld [vmem:[%s601_s1 + $0x128] sm:$0xff] }
  0x10   :  { %146 = vmatpush.msra.mxu0 %v31_v22  ;;  %184 = vmatpush.msra.mxu2 %v65_v28  ;;  %v42_v43 = vld [vmem:[%s601_s1 + $0x98] sm:$0xff]  ;;  %v77_v45 = vld [vmem:[%s601_s1 + $0x1b0] sm:$0xff]  ;;  %v76_v49 = vld [vmem:[%s601_s1 + $0x1a8] sm:$0xff] }
  0x11   :  { %166 = vmatpush.msra.mxu1 %v47_v23  ;;  %204 = vmatpush.msra.mxu3 %v81_v29  ;;  %v25_v46 = vld [vmem:[%s601_s1 + $0x10] sm:$0xff]  ;;  %v24_v50 = vld [vmem:[%s601_s1 + $0x8] sm:$0xff]  ;;  %v59_v52 = vld [vmem:[%s601_s1 + $0x120] sm:$0xff] }
  0x12   :  { %147 = vmatpush.msra.mxu0 %v30_v26  ;;  %185 = vmatpush.msra.mxu2 %v64_v32  ;;  %v41_v47 = vld [vmem:[%s601_s1 + $0x90] sm:$0xff]  ;;  %v40_v51 = vld [vmem:[%s601_s1 + $0x88] sm:$0xff]  ;;  %v75_v53 = vld [vmem:[%s601_s1 + $0x1a0] sm:$0xff] }
  0x13   :  { %167 = vmatpush.msra.mxu1 %v46_v27  ;;  %205 = vmatpush.msra.mxu3 %v80_v33  ;;  %v20_v54 = vld [vmem:[%s602_s0 + $0x8] sm:$0xff]  ;;  %v23_v55 = vld [vmem:[%s601_s1] sm:$0xff]  ;;  %v102_v57 = vld [vmem:[%s601_s1 + $0x278] sm:$0xff] }
  0x14   :  { %148 = vmatpush.msra.mxu0 %v29_v30  ;;  %186 = vmatpush.msra.mxu2 %v63_v36  ;;  %v39_v56 = vld [vmem:[%s601_s1 + $0x80] sm:$0xff]  ;;  %124 = vst [vmem:[#allocation1 + $0x10] ss:$2 sm:$0xff] %v20_v54  ;;  %v118_v58 = vld [vmem:[%s601_s1 + $0x2f8] sm:$0xff]  ;;  %v101_v62 = vld [vmem:[%s601_s1 + $0x270] sm:$0xff] }
  0x15   :  { %168 = vmatpush.msra.mxu1 %v45_v31  ;;  %206 = vmatpush.msra.mxu3 %v79_v37  ;;  %v19_v59 = vld [vmem:[%s602_s0] sm:$0xff]  ;;  %v58_v60 = vld [vmem:[%s601_s1 + $0x118] sm:$0xff]  ;;  %v117_v63 = vld [vmem:[%s601_s1 + $0x2f0] sm:$0xff] }
  0x16   :  { %149 = vmatpush.msra.mxu0 %v28_v34  ;;  %187 = vmatpush.msra.mxu2 %v62_v40  ;;  %v74_v61 = vld [vmem:[%s601_s1 + $0x198] sm:$0xff]  ;;  %122 = vst [vmem:[#allocation1] ss:$2 sm:$0xff] %v19_v59  ;;  %v57_v0 = vld [vmem:[%s601_s1 + $0x110] sm:$0xff]  ;;  %v100_v3 = vld [vmem:[%s601_s1 + $0x268] sm:$0xff] }
  0x17   :  { %169 = vmatpush.msra.mxu1 %v44_v35  ;;  %207 = vmatpush.msra.mxu3 %v78_v41  ;;  %v73_v1 = vld [vmem:[%s601_s1 + $0x190] sm:$0xff]  ;;  %v116_v4 = vld [vmem:[%s601_s1 + $0x2e8] sm:$0xff]  ;;  %v99_v7 = vld [vmem:[%s601_s1 + $0x260] sm:$0xff]  ;;  %v277_v41 = vmov 0.0  }
  0x18   :  { %150 = vmatpush.msra.mxu0 %v27_v38  ;;  %188 = vmatpush.msra.mxu2 %v61_v44  ;;  %v21_v2 = vld [vmem:[%s602_s0 + $0x10] sm:$0xff]  ;;  %v56_v5 = vld [vmem:[%s601_s1 + $0x108] sm:$0xff]  ;;  %v115_v8 = vld [vmem:[%s601_s1 + $0x2e0] sm:$0xff]  ;;  %18 = vst [vmem:[#allocation2] sm:$0xf] %v277_v41 }
  0x19   :  { %170 = vmatpush.msra.mxu1 %v43_v39  ;;  %208 = vmatpush.msra.mxu3 %v77_v45  ;;  %126 = vst [vmem:[#allocation1 + $0x20] ss:$2 sm:$0xff] %v21_v2  ;;  %v72_v6 = vld [vmem:[%s601_s1 + $0x188] sm:$0xff]  ;;  %v55_v9 = vld [vmem:[%s601_s1 + $0x100] sm:$0xff]  ;;  %v98_v11 = vld [vmem:[%s601_s1 + $0x258] sm:$0xff] }
  0x1a   :  { %151 = vmatpush.msra.mxu0 %v26_v42  ;;  %189 = vmatpush.msra.mxu2 %v60_v48  ;;  %v71_v10 = vld [vmem:[%s601_s1 + $0x180] sm:$0xff]  ;;  %v114_v12 = vld [vmem:[%s601_s1 + $0x2d8] sm:$0xff]  ;;  %v97_v15 = vld [vmem:[%s601_s1 + $0x250] sm:$0xff] }
  0x1b   :  { %171 = vmatpush.msra.mxu1 %v42_v43  ;;  %209 = vmatpush.msra.mxu3 %v76_v49  ;;  %v129_v13 = vld.sshfl [vmem:[#allocation1 + $0x10] sm:$0xff pattern:$0x75316420]  ;;  %v130_v14 = vld.sshfl [vmem:[#allocation1 + $0x18] sm:$0xff pattern:$0x75316420] }
  0x1c   :  { %152 = vmatpush.msra.mxu0 %v25_v46  ;;  %190 = vmatpush.msra.mxu2 %v59_v52  ;;  %v113_v16 = vld [vmem:[%s601_s1 + $0x2d0] sm:$0xff]  ;;  %v96_v19 = vld [vmem:[%s601_s1 + $0x248] sm:$0xff]  ;;  %v95_v21 = vld [vmem:[%s601_s1 + $0x240] sm:$0xff] }
  0x1d   :  { %172 = vmatpush.msra.mxu1 %v41_v47  ;;  %210 = vmatpush.msra.mxu3 %v75_v53  ;;  %v127_v17 = vld.sshfl [vmem:[#allocation1] sm:$0xff pattern:$0x75316420]  ;;  %v128_v18 = vld.sshfl [vmem:[#allocation1 + $0x8] sm:$0xff pattern:$0x75316420] }
  0x1e   :  { %153 = vmatpush.msra.mxu0 %v24_v50  ;;  %191 = vmatpush.msra.mxu2 %v58_v60  ;;  %v112_v20 = vld [vmem:[%s601_s1 + $0x2c8] sm:$0xff]  ;;  %v111_v22 = vld [vmem:[%s601_s1 + $0x2c0] sm:$0xff]  ;;  %v94_v23 = vld [vmem:[%s601_s1 + $0x238] sm:$0xff] }
  0x1f   :  { %173 = vmatpush.msra.mxu1 %v40_v51  ;;  %211 = vmatpush.msra.mxu3 %v74_v61  ;;  %v110_v24 = vld [vmem:[%s601_s1 + $0x2b8] sm:$0xff]  ;;  %v93_v25 = vld [vmem:[%s601_s1 + $0x230] sm:$0xff]  ;;  %v92_v27 = vld [vmem:[%s601_s1 + $0x228] sm:$0xff] }
  0x20   :  { %154 = vmatpush.msra.mxu0 %v23_v55  ;;  %192 = vmatpush.msra.mxu2 %v57_v0  ;;  %v109_v26 = vld [vmem:[%s601_s1 + $0x2b0] sm:$0xff]  ;;  %v108_v28 = vld [vmem:[%s601_s1 + $0x2a8] sm:$0xff]  ;;  %v91_v29 = vld [vmem:[%s601_s1 + $0x220] sm:$0xff] }
  0x21   :  { %174 = vmatpush.msra.mxu1 %v39_v56  ;;  %212 = vmatpush.msra.mxu3 %v73_v1  ;;  %v107_v30 = vld [vmem:[%s601_s1 + $0x2a0] sm:$0xff]  ;;  %v90_v31 = vld [vmem:[%s601_s1 + $0x218] sm:$0xff]  ;;  %v89_v33 = vld [vmem:[%s601_s1 + $0x210] sm:$0xff] }
  0x22   :  { %219 = vmatpush.msrb.mxu0 %v102_v57  ;;  %193 = vmatpush.msra.mxu2 %v56_v5  ;;  %v106_v32 = vld [vmem:[%s601_s1 + $0x298] sm:$0xff]  ;;  %v105_v34 = vld [vmem:[%s601_s1 + $0x290] sm:$0xff]  ;;  %v88_v35 = vld [vmem:[%s601_s1 + $0x208] sm:$0xff] }
  0x23   :  { %239 = vmatpush.msrb.mxu1 %v118_v58  ;;  %213 = vmatpush.msra.mxu3 %v72_v6  ;;  %v104_v36 = vld [vmem:[%s601_s1 + $0x288] sm:$0xff]  ;;  %v87_v37 = vld [vmem:[%s601_s1 + $0x200] sm:$0xff] }
  0x24   :  { %220 = vmatpush.msrb.mxu0 %v101_v62  ;;  %194 = vmatpush.msra.mxu2 %v55_v9  ;;  %v103_v38 = vld [vmem:[%s601_s1 + $0x280] sm:$0xff]  ;;  %v132_v40 = vld.sshfl [vmem:[#allocation1 + $0x28] sm:$0xff pattern:$0x75316420] }
  0x25   :  { %240 = vmatpush.msrb.mxu1 %v117_v63  ;;  %214 = vmatpush.msra.mxu3 %v71_v10  ;;  %v131_v39 = vld.sshfl [vmem:[#allocation1 + $0x20] sm:$0xff pattern:$0x75316420]  ;;  %v22_v52 = vld [vmem:[#allocation2] sm:$0xf] }
  0x26   :  { %221 = vmatpush.msrb.mxu0 %v100_v3  ;;  %195 = vmatmul.f32.vlgmr.msra.gmra.mxu2 %v129_v13  ;;  %v276_v55 = vld [vmem:[%s603_s2] ss:$0 sm:$0xff] }
  0x27   :  { %241 = vmatpush.msrb.mxu1 %v116_v4  ;;  %215 = vmatmul.f32.vlgmr.msra.gmra.mxu3 %v130_v14 }
  0x28   :  { %222 = vmatpush.msrb.mxu0 %v99_v7  ;;  %175 = vmatmul.f32.vlgmr.msra.gmra.mxu1 %v128_v18 }
  0x29   :  { %242 = vmatpush.msrb.mxu1 %v115_v8  ;;  %155 = vmatmul.f32.vlgmr.msra.gmra.mxu0 %v127_v17 }
  0x2a   :  { %223 = vmatpush.msrb.mxu0 %v98_v11 }
  0x2b   :  { %243 = vmatpush.msrb.mxu1 %v114_v12 }
  0x2c   :  { %224 = vmatpush.msrb.mxu0 %v97_v15 }
  0x2d   :  { %244 = vmatpush.msrb.mxu1 %v113_v16 }
  0x2e   :  { %225 = vmatpush.msrb.mxu0 %v96_v19 }
  0x2f   :  { %245 = vmatpush.msrb.mxu1 %v112_v20 }
  0x30   :  { %226 = vmatpush.msrb.mxu0 %v95_v21 }
  0x31   :  { %246 = vmatpush.msrb.mxu1 %v111_v22 }
  0x32   :  { %227 = vmatpush.msrb.mxu0 %v94_v23 }
  0x33   :  { %247 = vmatpush.msrb.mxu1 %v110_v24 }
  0x34   :  { %228 = vmatpush.msrb.mxu0 %v93_v25 }
  0x35   :  { %248 = vmatpush.msrb.mxu1 %v109_v26 }
  0x36   :  { %229 = vmatpush.msrb.mxu0 %v92_v27 }
  0x37   :  { %249 = vmatpush.msrb.mxu1 %v108_v28 }
  0x38   :  { %230 = vmatpush.msrb.mxu0 %v91_v29 }
  0x39   :  { %250 = vmatpush.msrb.mxu1 %v107_v30 }
  0x3a   :  { %231 = vmatpush.msrb.mxu0 %v90_v31 }
  0x3b   :  { %251 = vmatpush.msrb.mxu1 %v106_v32 }
  0x3c   :  { %232 = vmatpush.msrb.mxu0 %v89_v33 }
  0x3d   :  { %252 = vmatpush.msrb.mxu1 %v105_v34 }
  0x3e   :  { %233 = vmatpush.msrb.mxu0 %v88_v35 }
  0x3f   :  { %253 = vmatpush.msrb.mxu1 %v104_v36 }
  0x40   :  { %234 = vmatpush.msrb.mxu0 %v87_v37 }
  0x41   :  { %254 = vmatpush.msrb.mxu1 %v103_v38  ;;  %235 = vmatmul.f32.vlgmr.msrb.gmra.mxu0 %v131_v39 }
  0x42   :  { %255 = vmatmul.f32.vlgmr.msrb.gmra.mxu1 %v132_v40 }
  0xa5   :  { %v176_v43 = vpop.f32.mrf.mxu1 }
  0xa6   :  { %v156_v42 = vpop.f32.mrf.mxu0 }
  0xa7   :  { %v177_v44 = vadd.f32 %v176_v43, %v156_v42 }
  0xa9   :  { %v196_v45 = vpop.f32.mrf.mxu2 }
  0xaa   :  { %v197_v46 = vadd.f32 %v196_v45, %v177_v44  ;;  %v216_v47 = vpop.f32.mrf.mxu3 }
  0xac   :  { %v217_v48 = vadd.f32 %v216_v47, %v197_v46 }
  0xbe   :  { %v236_v49 = vpop.f32.mrf.mxu0 }
  0xbf   :  { %v256_v50 = vpop.f32.mrf.mxu1  ;;  %v237_v51 = vadd.f32 %v236_v49, %v217_v48 }
  0xc1   :  { %v257_v53 = vadd.f32 %v256_v50, %v237_v51 }
  0xc3   :  { %v259_v54 = vadd.f32 %v257_v53, %v22_v52 }
  0xc5   :  { %260 = vst [vmem:[#allocation2] sm:$0xf] %v259_v54 }
  0xcc   :  { %v264_v56 = vld [vmem:[#allocation2] sm:$0xf] }
  0xcd   :  { %v269_v57 = vadd.f32 %v276_v55, %v264_v56 }
  0xcf   :  { %270 = vst [vmem:[%s604_s3] sm:$0xf] %v269_v57 }

// kernel: poetic_embedder_forward.4
= control target key start
LH: loop header
LB: loop body
LE: loop exit
PB: predicated region body
PF: predicated region fallthrough
CT: control target
= control target key end

     0   :  { %s1667_s12 = smov 0   ;;  %s1669_s13 = smov 0   ;;  %s2304_s0 = inlined_call_operand.vmem [shape: f32[2,3,256], index: 0, kind: input, shape index: {}]   ;;  %s2305_s1 = inlined_call_operand.vmem [shape: bf16[3,768], index: 1, kind: input, shape index: {}]   ;;  %s2306_s2 = inlined_call_operand.vmem [shape: f32[1,768], index: 2, kind: input, shape index: {}]   ;;  %s2307_s3 = inlined_call_operand.vmem [shape: f32[2,1,768], index: 3, kind: output, shape index: {}]  }
   0x1   :  { %s1671_s14 = smov 0  }
   0x2 LB: > { %s32_s15 = sadd.s32 1, %s1639_s13  ;;  %p1489_p0 = scmp.ge.s32.totalorder %s1643_s14, 1  ;;  %s1643_s14 = sphi %s1671_s14, %s13_s14   ;;  %s1639_s13 = sphi %s1669_s13, %s2311_s13   ;;  %s1635_s12 = sphi %s1667_s12, %s2310_s12  }
   0x3   : > { %p34_p1 = scmp.ge.s32.totalorder %s32_s15, 2  ;;  %p186_p2 = scmp.lt.s32.totalorder %s1643_s14, 3 }
   0x5   : > { %s2313_s15 = smov (%p34_p1, %s32_s15), 0  ;;  %p187_p3 = pnand %p1489_p0, %p186_p2 }
   0x6   : > { %p227_p4 = scmp.lt.s32.totalorder (!%p187_p3), %s1635_s12, 1 }
   0x7   : > { %190 = sbr.rel (%p187_p3) target bundleno = 753 (0x2f1), region = 32 }
   0xc   : > { %v261_v0 = vlaneseq  ;;  %s2315_s12 = smov (!%p227_p4, %s1635_s12), 1  ;;  %v1645_v3 = vmov 0.0   ;;  %v275_v4 = vld [vmem:[%s2305_s1] sm:$0xff]  ;;  %vm375_vm1 = vcmask 1040384   ;;  %vm376_vm2 = vcmask 1041408  }
   0xd   : > { %s1590_s16 = sshll.u32 %s2315_s12, 3  ;;  %s1593_s17 = smul.u32 6, %s2315_s12  ;;  %v1646_v9 = vmov 65535   ;;  %v276_v20 = vld [vmem:[%s2305_s1 + $0x8] sm:$0xf]  ;;  %vm326_vm3 = vcmask 23552  }
   0xe   : > { %vm1685_vm0 = vcmp.lt.s32.totalorder %v261_v0, 768  ;;  %s234_s20 = scalar_lea.vmem %s2304_s0, %s1590_s16  ;;  %v377_v10 = vsel %vm375_vm1, 4294967295, %v1646_v9  ;;  %319 = vst [vmem:[#allocation1 + $0x20] ss:$4 sm:$0xff] %v276_v20  ;;  %v1807_v41 = vld [vmem:[%s2306_s2] sm:$0x3f] }
   0xf   : > { %s1695_s23 = scalar_lea.vmem %s2307_s3, %s1593_s17  ;;  %v266_v2 = vld [vmem:[%s234_s20] sm:$0x77]  ;;  %v378_v11 = vsel %vm376_vm2, %v377_v10, 0  ;;  %v1810_v44 = vperm.slane %v1807_v41, 0  ;;  %v1813_v45 = vperm.slane %v1807_v41, 1  ;;  %vm1353_vm4 = vcmask 1043459  }
  0x10   : > { %265 = vst.msk [vmem:[%s1695_s23] sm:$0x3f] %vm1685_vm0, %v1645_v3  ;;  %vm1355_vm5 = vcmask 1044483   ;;  %vm1357_vm6 = vcmask 1042432  }
  0x11   : > { %268 = vst [vmem:[#allocation1] ss:$2 sm:$0xff] %v266_v2 }
  0x15   : > { %v324_v21 = vld.sshfl [vmem:[#allocation1 + $0x20] sm:$0xff pattern:$0x73625140]  ;;  %v325_v22 = vld.sshfl [vmem:[#allocation1 + $0x28] sm:$0xff pattern:$0x73625140] }
  0x16   : > { %v387_v23 = vand.u32 %v378_v11, %v324_v21  ;;  %v389_v24 = vand.u32 %v378_v11, %v325_v22 }
  0x18   : > { %v269_v5 = vld.sshfl [vmem:[#allocation1] sm:$0xff pattern:$0x75316420]  ;;  %v270_v6 = vld.sshfl [vmem:[#allocation1 + $0x8] sm:$0xff pattern:$0x75316420] }
  0x19   : > { %v273_v7 = vpack.c.bf16 %v269_v5, %v269_v5  ;;  %v274_v8 = vpack.c.bf16 %v270_v6, %v270_v6  ;;  %316 = vst [vmem:[#allocation1] ss:$4 sm:$0xff] %v275_v4 }
  0x1b   : > { %291 = vxpose.binary.xlu0.c.b16.start.end [1/2] (short) %v274_v8, %v273_v7, 128 }
  0x20   : > { %v320_v12 = vld.sshfl [vmem:[#allocation1] sm:$0xff pattern:$0x73625140]  ;;  %v321_v13 = vld.sshfl [vmem:[#allocation1 + $0x8] sm:$0xff pattern:$0x73625140] }
  0x21   : > { %v379_v14 = vand.u32 %v378_v11, %v320_v12  ;;  %v381_v15 = vand.u32 %v378_v11, %v321_v13  ;;  %v323_v16 = vld.sshfl [vmem:[#allocation1 + $0x18] sm:$0xff pattern:$0x73625140]  ;;  %v322_v17 = vld.sshfl [vmem:[#allocation1 + $0x10] sm:$0xff pattern:$0x73625140] }
  0x22   : > { %v385_v18 = vand.u32 %v378_v11, %v323_v16  ;;  %v383_v19 = vand.u32 %v378_v11, %v322_v17 }
  0x23   : > { %398 = vmatpush.bf16.msra.mxu0 %v379_v14  ;;  %487 = vmatpush.bf16.msra.mxu1 %v381_v15 }
  0x24   : > { %1591 = vmatpush.bf16.msra.mxu2 %v379_v14  ;;  %1592 = vmatpush.bf16.msra.mxu3 %v381_v15 }
  0x27   : > { %754 = vmatpush.bf16.msrb.mxu0 %v387_v23  ;;  %843 = vmatpush.bf16.msrb.mxu1 %v389_v24 }
  0x28   : > { %665 = vmatpush.bf16.msrb.mxu3 %v385_v18  ;;  %576 = vmatpush.bf16.msrb.mxu2 %v383_v19 }
  0xc7   : > { %v1708_v25 = vpop.trf.xlu0 }
  0xc8   : > { %1492 = vmatmul.msk.bf16.vlgmr.msra.gmra.mxu0 %vm326_vm3, %v1708_v25  ;;  %1508 = vmatmul.msk.bf16.vlgmr.msra.gmra.mxu1 %vm326_vm3, %v1708_v25 }
  0xcf   : > { %v1714_v26 = vpop.trf.xlu0 }
  0xd0   : > { %1500 = vmatmul.msk.bf16.vlgmr.msra.gmra.mxu2 %vm326_vm3, %v1714_v26  ;;  %1516 = vmatmul.msk.bf16.vlgmr.msra.gmra.mxu3 %vm326_vm3, %v1714_v26 }
  0xd7   : > { %v1720_v27 = vpop.trf.xlu0 }
  0xd8   : > { %1493 = vmatmul.msk.bf16.gmra.mxu0 %vm326_vm3, %v1720_v27  ;;  %1509 = vmatmul.msk.bf16.gmra.mxu1 %vm326_vm3, %v1720_v27 }
  0xdf   : > { %v1726_v28 = vpop.trf.xlu0 }
  0xe0   : > { %1501 = vmatmul.msk.bf16.gmra.mxu2 %vm326_vm3, %v1726_v28  ;;  %1517 = vmatmul.msk.bf16.gmra.mxu3 %vm326_vm3, %v1726_v28 }
  0xe7   : > { %v1732_v29 = vpop.trf.xlu0 }
  0xe8   : > { %1494 = vmatmul.msk.bf16.gmra.mxu0 %vm326_vm3, %v1732_v29  ;;  %1510 = vmatmul.msk.bf16.gmra.mxu1 %vm326_vm3, %v1732_v29 }
  0xef   : > { %v1738_v30 = vpop.trf.xlu0 }
  0xf0   : > { %1502 = vmatmul.msk.bf16.gmra.mxu2 %vm326_vm3, %v1738_v30  ;;  %1518 = vmatmul.msk.bf16.gmra.mxu3 %vm326_vm3, %v1738_v30 }
  0xf7   : > { %v1744_v31 = vpop.trf.xlu0 }
  0xf8   : > { %1495 = vmatmul.msk.bf16.gmra.mxu0 %vm326_vm3, %v1744_v31  ;;  %1511 = vmatmul.msk.bf16.gmra.mxu1 %vm326_vm3, %v1744_v31 }
  0xff   : > { %v1750_v32 = vpop.trf.xlu0 }
 0x100   : > { %1503 = vmatmul.msk.bf16.gmra.mxu2 %vm326_vm3, %v1750_v32  ;;  %1519 = vmatmul.msk.bf16.gmra.mxu3 %vm326_vm3, %v1750_v32 }
 0x107   : > { %v1756_v33 = vpop.trf.xlu0 }
 0x108   : > { %1496 = vmatmul.msk.bf16.gmra.mxu0 %vm326_vm3, %v1756_v33  ;;  %1512 = vmatmul.msk.bf16.gmra.mxu1 %vm326_vm3, %v1756_v33 }
 0x10f   : > { %v1762_v34 = vpop.trf.xlu0 }
 0x110   : > { %1504 = vmatmul.msk.bf16.gmra.mxu2 %vm326_vm3, %v1762_v34  ;;  %1520 = vmatmul.msk.bf16.gmra.mxu3 %vm326_vm3, %v1762_v34 }
 0x117   : > { %v1768_v35 = vpop.trf.xlu0 }
 0x118   : > { %1497 = vmatmul.msk.bf16.gmra.mxu0 %vm326_vm3, %v1768_v35  ;;  %1513 = vmatmul.msk.bf16.gmra.mxu1 %vm326_vm3, %v1768_v35 }
 0x11f   : > { %v1774_v36 = vpop.trf.xlu0 }
 0x120   : > { %1505 = vmatmul.msk.bf16.gmra.mxu2 %vm326_vm3, %v1774_v36  ;;  %1521 = vmatmul.msk.bf16.gmra.mxu3 %vm326_vm3, %v1774_v36 }
 0x127   : > { %v1780_v37 = vpop.trf.xlu0 }
 0x128   : > { %1498 = vmatmul.msk.bf16.gmra.mxu0 %vm326_vm3, %v1780_v37  ;;  %1514 = vmatmul.msk.bf16.gmra.mxu1 %vm326_vm3, %v1780_v37 }
 0x12f   : > { %v1786_v38 = vpop.trf.xlu0 }
 0x130   : > { %1506 = vmatmul.msk.bf16.gmra.mxu2 %vm326_vm3, %v1786_v38  ;;  %1522 = vmatmul.msk.bf16.gmra.mxu3 %vm326_vm3, %v1786_v38 }
 0x137   : > { %v1792_v39 = vpop.trf.xlu0 }
 0x138   : > { %1499 = vmatmul.msk.bf16.gmra.mxu0 %vm326_vm3, %v1792_v39  ;;  %1515 = vmatmul.msk.bf16.gmra.mxu1 %vm326_vm3, %v1792_v39 }
 0x13f   : > { %v1798_v40 = vpop.trf.xlu0 }
 0x140   : > { %1507 = vmatmul.msk.bf16.gmra.mxu2 %vm326_vm3, %v1798_v40  ;;  %1523 = vmatmul.msk.bf16.gmra.mxu3 %vm326_vm3, %v1798_v40 }
 0x145   : > { %v400_v42 = vpop.f32.mrf.mxu0  ;;  %v489_v43 = vpop.f32.mrf.mxu1 }
 0x146   : > { %v401_v46 = vadd.f32 %v400_v42, %v1810_v44  ;;  %v490_v47 = vadd.f32 %v489_v43, %v1813_v45 }
 0x148   : > { %1556 = vmatmul.msk.bf16.vlgmr.msrb.gmra.mxu0 %vm326_vm3, %v1708_v25  ;;  %1572 = vmatmul.msk.bf16.vlgmr.msrb.gmra.mxu1 %vm326_vm3, %v1708_v25  ;;  %v925_v52 = vmax.f32 %v401_v46, 0.0  ;;  %v926_v53 = vmax.f32 %v490_v47, 0.0 }
 0x14d   : > { %v402_v48 = vpop.f32.mrf.mxu0  ;;  %v491_v49 = vpop.f32.mrf.mxu1 }
 0x14e   : > { %v403_v50 = vadd.f32 %v402_v48, %v1810_v44  ;;  %v492_v51 = vadd.f32 %v491_v49, %v1813_v45 }
 0x150   : > { %v931_v54 = vmax.f32 %v403_v50, 0.0  ;;  %v932_v55 = vmax.f32 %v492_v51, 0.0  ;;  %1524 = vmatmul.msk.bf16.vlgmr.msrb.gmra.mxu2 %vm326_vm3, %v1708_v25  ;;  %1540 = vmatmul.msk.bf16.vlgmr.msrb.gmra.mxu3 %vm326_vm3, %v1708_v25 }
 0x152   : > { %v1118_v56 = vadd.f32 %v931_v54, %v925_v52  ;;  %v1155_v57 = vadd.f32 %v932_v55, %v926_v53 }
 0x153   : > { %v1827_v58 = vpop.f32.mrf.mxu2  ;;  %v1829_v59 = vpop.f32.mrf.mxu3 }
 0x155   : > { %v405_v60 = vpop.f32.mrf.mxu0  ;;  %v494_v61 = vpop.f32.mrf.mxu1 }
 0x156   : > { %v406_v62 = vadd.f32 %v405_v60, %v1810_v44  ;;  %v495_v63 = vadd.f32 %v494_v61, %v1813_v45 }
 0x158   : > { %v937_v0 = vmax.f32 %v406_v62, 0.0  ;;  %v938_v2 = vmax.f32 %v495_v63, 0.0  ;;  %1557 = vmatmul.msk.bf16.gmra.mxu0 %vm326_vm3, %v1720_v27  ;;  %1573 = vmatmul.msk.bf16.gmra.mxu1 %vm326_vm3, %v1720_v27 }
 0x15a   : > { %v1119_v3 = vadd.f32 %v1118_v56, %v937_v0  ;;  %v1156_v4 = vadd.f32 %v1155_v57, %v938_v2 }
 0x15b   : > { %v1837_v5 = vpop.f32.mrf.mxu2  ;;  %v1839_v6 = vpop.f32.mrf.mxu3 }
 0x15d   : > { %v407_v7 = vpop.f32.mrf.mxu0  ;;  %v496_v8 = vpop.f32.mrf.mxu1 }
 0x15e   : > { %v408_v9 = vadd.f32 %v407_v7, %v1810_v44  ;;  %v497_v10 = vadd.f32 %v496_v8, %v1813_v45 }
 0x160   : > { %v943_v11 = vmax.f32 %v408_v9, 0.0  ;;  %v944_v12 = vmax.f32 %v497_v10, 0.0  ;;  %1525 = vmatmul.msk.bf16.gmra.mxu2 %vm326_vm3, %v1720_v27  ;;  %1541 = vmatmul.msk.bf16.gmra.mxu3 %vm326_vm3, %v1720_v27 }
 0x162   : > { %v1120_v13 = vadd.f32 %v1119_v3, %v943_v11  ;;  %v1157_v14 = vadd.f32 %v1156_v4, %v944_v12 }
 0x163   : > { %v1847_v15 = vpop.f32.mrf.mxu2  ;;  %v1849_v16 = vpop.f32.mrf.mxu3 }
 0x165   : > { %v410_v17 = vpop.f32.mrf.mxu0  ;;  %v499_v18 = vpop.f32.mrf.mxu1 }
 0x166   : > { %v411_v19 = vadd.f32 %v410_v17, %v1810_v44  ;;  %v500_v20 = vadd.f32 %v499_v18, %v1813_v45 }
 0x168   : > { %v949_v21 = vmax.f32 %v411_v19, 0.0  ;;  %v950_v22 = vmax.f32 %v500_v20, 0.0  ;;  %1558 = vmatmul.msk.bf16.gmra.mxu0 %vm326_vm3, %v1732_v29  ;;  %1574 = vmatmul.msk.bf16.gmra.mxu1 %vm326_vm3, %v1732_v29 }
 0x16a   : > { %v1121_v23 = vadd.f32 %v1120_v13, %v949_v21  ;;  %v1158_v24 = vadd.f32 %v1157_v14, %v950_v22 }
 0x16b   : > { %v1857_v25 = vpop.f32.mrf.mxu2  ;;  %v1859_v27 = vpop.f32.mrf.mxu3 }
 0x16d   : > { %v412_v42 = vpop.f32.mrf.mxu0  ;;  %v501_v43 = vpop.f32.mrf.mxu1 }
 0x16e   : > { %v413_v46 = vadd.f32 %v412_v42, %v1810_v44  ;;  %v502_v47 = vadd.f32 %v501_v43, %v1813_v45 }
 0x170   : > { %v955_v48 = vmax.f32 %v413_v46, 0.0  ;;  %v956_v49 = vmax.f32 %v502_v47, 0.0  ;;  %1526 = vmatmul.msk.bf16.gmra.mxu2 %vm326_vm3, %v1732_v29  ;;  %1542 = vmatmul.msk.bf16.gmra.mxu3 %vm326_vm3, %v1732_v29 }
 0x172   : > { %v1122_v50 = vadd.f32 %v1121_v23, %v955_v48  ;;  %v1159_v51 = vadd.f32 %v1158_v24, %v956_v49 }
 0x173   : > { %v1867_v52 = vpop.f32.mrf.mxu2  ;;  %v1869_v53 = vpop.f32.mrf.mxu3 }
 0x175   : > { %v415_v54 = vpop.f32.mrf.mxu0  ;;  %v504_v55 = vpop.f32.mrf.mxu1 }
 0x176   : > { %v416_v56 = vadd.f32 %v415_v54, %v1810_v44  ;;  %v505_v57 = vadd.f32 %v504_v55, %v1813_v45 }
 0x178   : > { %v961_v60 = vmax.f32 %v416_v56, 0.0  ;;  %v962_v61 = vmax.f32 %v505_v57, 0.0  ;;  %1559 = vmatmul.msk.bf16.gmra.mxu0 %vm326_vm3, %v1744_v31  ;;  %1575 = vmatmul.msk.bf16.gmra.mxu1 %vm326_vm3, %v1744_v31 }
 0x17a   : > { %v1123_v29 = vadd.f32 %v1122_v50, %v961_v60  ;;  %v1160_v62 = vadd.f32 %v1159_v51, %v962_v61 }
 0x17b   : > { %v1877_v63 = vpop.f32.mrf.mxu2  ;;  %v1879_v0 = vpop.f32.mrf.mxu3 }
 0x17d   : > { %v417_v2 = vpop.f32.mrf.mxu0  ;;  %v506_v3 = vpop.f32.mrf.mxu1 }
 0x17e   : > { %v418_v4 = vadd.f32 %v417_v2, %v1810_v44  ;;  %v507_v7 = vadd.f32 %v506_v3, %v1813_v45 }
 0x180   : > { %v967_v8 = vmax.f32 %v418_v4, 0.0  ;;  %v968_v9 = vmax.f32 %v507_v7, 0.0  ;;  %1527 = vmatmul.msk.bf16.gmra.mxu2 %vm326_vm3, %v1744_v31  ;;  %1543 = vmatmul.msk.bf16.gmra.mxu3 %vm326_vm3, %v1744_v31 }
 0x182   : > { %v1124_v10 = vadd.f32 %v1123_v29, %v967_v8  ;;  %v1161_v11 = vadd.f32 %v1160_v62, %v968_v9 }
 0x183   : > { %v1887_v12 = vpop.f32.mrf.mxu2  ;;  %v1889_v13 = vpop.f32.mrf.mxu3 }
 0x185   : > { %v420_v14 = vpop.f32.mrf.mxu0  ;;  %v509_v17 = vpop.f32.mrf.mxu1 }
 0x186   : > { %v421_v18 = vadd.f32 %v420_v14, %v1810_v44  ;;  %v510_v19 = vadd.f32 %v509_v17, %v1813_v45 }
 0x188   : > { %v973_v20 = vmax.f32 %v421_v18, 0.0  ;;  %v974_v21 = vmax.f32 %v510_v19, 0.0  ;;  %1560 = vmatmul.msk.bf16.gmra.mxu0 %vm326_vm3, %v1756_v33  ;;  %1576 = vmatmul.msk.bf16.gmra.mxu1 %vm326_vm3, %v1756_v33 }
 0x18a   : > { %v1125_v31 = vadd.f32 %v1124_v10, %v973_v20  ;;  %v1162_v22 = vadd.f32 %v1161_v11, %v974_v21 }
 0x18b   : > { %v1897_v23 = vpop.f32.mrf.mxu2  ;;  %v1899_v24 = vpop.f32.mrf.mxu3 }
 0x18d   : > { %v422_v42 = vpop.f32.mrf.mxu0  ;;  %v511_v43 = vpop.f32.mrf.mxu1 }
 0x18e   : > { %v423_v46 = vadd.f32 %v422_v42, %v1810_v44  ;;  %v512_v47 = vadd.f32 %v511_v43, %v1813_v45 }
 0x190   : > { %v979_v48 = vmax.f32 %v423_v46, 0.0  ;;  %v980_v49 = vmax.f32 %v512_v47, 0.0  ;;  %1528 = vmatmul.msk.bf16.gmra.mxu2 %vm326_vm3, %v1756_v33  ;;  %1544 = vmatmul.msk.bf16.gmra.mxu3 %vm326_vm3, %v1756_v33 }
 0x192   : > { %v1126_v50 = vadd.f32 %v1125_v31, %v979_v48  ;;  %v1163_v51 = vadd.f32 %v1162_v22, %v980_v49 }
 0x193   : > { %v1907_v54 = vpop.f32.mrf.mxu2  ;;  %v1909_v55 = vpop.f32.mrf.mxu3 }
 0x195   : > { %v425_v56 = vpop.f32.mrf.mxu0  ;;  %v514_v57 = vpop.f32.mrf.mxu1 }
 0x196   : > { %v426_v60 = vadd.f32 %v425_v56, %v1810_v44  ;;  %v515_v61 = vadd.f32 %v514_v57, %v1813_v45 }
 0x198   : > { %v985_v29 = vmax.f32 %v426_v60, 0.0  ;;  %v986_v62 = vmax.f32 %v515_v61, 0.0  ;;  %1561 = vmatmul.msk.bf16.gmra.mxu0 %vm326_vm3, %v1768_v35  ;;  %1577 = vmatmul.msk.bf16.gmra.mxu1 %vm326_vm3, %v1768_v35 }
 0x19a   : > { %v1127_v33 = vadd.f32 %v1126_v50, %v985_v29  ;;  %v1164_v2 = vadd.f32 %v1163_v51, %v986_v62 }
 0x19b   : > { %v1917_v3 = vpop.f32.mrf.mxu2  ;;  %v1919_v4 = vpop.f32.mrf.mxu3 }
 0x19d   : > { %v427_v7 = vpop.f32.mrf.mxu0  ;;  %v516_v8 = vpop.f32.mrf.mxu1 }
 0x19e   : > { %v428_v9 = vadd.f32 %v427_v7, %v1810_v44  ;;  %v517_v10 = vadd.f32 %v516_v8, %v1813_v45 }
 0x1a0   : > { %v991_v11 = vmax.f32 %v428_v9, 0.0  ;;  %v992_v14 = vmax.f32 %v517_v10, 0.0  ;;  %1529 = vmatmul.msk.bf16.gmra.mxu2 %vm326_vm3, %v1768_v35  ;;  %1545 = vmatmul.msk.bf16.gmra.mxu3 %vm326_vm3, %v1768_v35 }
 0x1a2   : > { %v1128_v17 = vadd.f32 %v1127_v33, %v991_v11  ;;  %v1165_v18 = vadd.f32 %v1164_v2, %v992_v14 }
 0x1a3   : > { %v1927_v19 = vpop.f32.mrf.mxu2  ;;  %v1929_v20 = vpop.f32.mrf.mxu3 }
 0x1a5   : > { %v430_v21 = vpop.f32.mrf.mxu0  ;;  %v519_v31 = vpop.f32.mrf.mxu1 }
 0x1a6   : > { %v431_v22 = vadd.f32 %v430_v21, %v1810_v44  ;;  %v520_v42 = vadd.f32 %v519_v31, %v1813_v45 }
 0x1a8   : > { %v997_v43 = vmax.f32 %v431_v22, 0.0  ;;  %v998_v46 = vmax.f32 %v520_v42, 0.0  ;;  %1562 = vmatmul.msk.bf16.gmra.mxu0 %vm326_vm3, %v1780_v37  ;;  %1578 = vmatmul.msk.bf16.gmra.mxu1 %vm326_vm3, %v1780_v37  ;;  %v441_v42 = vadd.f32 %v1827_v58, %v1810_v44  ;;  %v446_v58 = vadd.f32 %v1847_v15, %v1810_v44 }
 0x1aa   : > { %v1129_v35 = vadd.f32 %v1128_v17, %v997_v43  ;;  %v1166_v47 = vadd.f32 %v1165_v18, %v998_v46  ;;  %v530_v43 = vadd.f32 %v1829_v59, %v1813_v45  ;;  %v535_v59 = vadd.f32 %v1849_v16, %v1813_v45 }
 0x1ab   : > { %v1937_v48 = vpop.f32.mrf.mxu2  ;;  %v1939_v49 = vpop.f32.mrf.mxu3 }
 0x1ac   : > { %v1034_v16 = vmax.f32 %v535_v59, 0.0 }
 0x1ad   : > { %v432_v50 = vpop.f32.mrf.mxu0  ;;  %v521_v51 = vpop.f32.mrf.mxu1 }
 0x1ae   : > { %v433_v56 = vadd.f32 %v432_v50, %v1810_v44  ;;  %v522_v57 = vadd.f32 %v521_v51, %v1813_v45  ;;  %v532_v50 = vadd.f32 %v1839_v6, %v1813_v45 }
 0x1b0   : > { %v1003_v60 = vmax.f32 %v433_v56, 0.0  ;;  %v1004_v61 = vmax.f32 %v522_v57, 0.0  ;;  %1530 = vmatmul.msk.bf16.gmra.mxu2 %vm326_vm3, %v1780_v37  ;;  %1546 = vmatmul.msk.bf16.gmra.mxu3 %vm326_vm3, %v1780_v37  ;;  %v1021_v57 = vmax.f32 %v441_v42, 0.0 }
 0x1b2   : > { %v1130_v29 = vadd.f32 %v1129_v35, %v1003_v60  ;;  %v1167_v62 = vadd.f32 %v1166_v47, %v1004_v61  ;;  %v443_v47 = vadd.f32 %v1837_v5, %v1810_v44  ;;  %v448_v5 = vadd.f32 %v1857_v25, %v1810_v44 }
 0x1b3   : > { %v1947_v33 = vpop.f32.mrf.mxu2  ;;  %v1949_v2 = vpop.f32.mrf.mxu3  ;;  %v1022_v60 = vmax.f32 %v530_v43, 0.0  ;;  %v451_v25 = vadd.f32 %v1867_v52, %v1810_v44  ;;  %v456_v43 = vadd.f32 %v1887_v12, %v1810_v44  ;;  %v458_v52 = vadd.f32 %v1897_v23, %v1810_v44 }
 0x1b4   : > { %v461_v12 = vadd.f32 %v1907_v54, %v1810_v44  ;;  %v2013_v23 = vperm.slane %v1807_v41, 5  ;;  %v550_v54 = vadd.f32 %v1909_v55, %v1813_v45 }
 0x1b5   : > { %v435_v7 = vpop.f32.mrf.mxu0  ;;  %v524_v8 = vpop.f32.mrf.mxu1  ;;  %v1057_v59 = vmax.f32 %v456_v43, 0.0 }
 0x1b6   : > { %v436_v9 = vadd.f32 %v435_v7, %v1810_v44  ;;  %v525_v10 = vadd.f32 %v524_v8, %v1813_v45  ;;  %v1028_v8 = vmax.f32 %v532_v50, 0.0 }
 0x1b8   : > { %v1009_v11 = vmax.f32 %v436_v9, 0.0  ;;  %v1010_v14 = vmax.f32 %v525_v10, 0.0  ;;  %1563 = vmatmul.msk.bf16.gmra.mxu0 %vm326_vm3, %v1792_v39  ;;  %1579 = vmatmul.msk.bf16.gmra.mxu1 %vm326_vm3, %v1792_v39  ;;  %v1033_v10 = vmax.f32 %v446_v58, 0.0 }
 0x1ba   : > { %v1131_v37 = vadd.f32 %v1130_v29, %v1009_v11  ;;  %v1168_v17 = vadd.f32 %v1167_v62, %v1010_v14  ;;  %v1027_v29 = vmax.f32 %v443_v47, 0.0  ;;  %v1039_v11 = vmax.f32 %v448_v5, 0.0 }
 0x1bb   : > { %v1957_v18 = vpop.f32.mrf.mxu2  ;;  %v1959_v21 = vpop.f32.mrf.mxu3 }
 0x1bd   : > { %v437_v31 = vpop.f32.mrf.mxu0  ;;  %v526_v22 = vpop.f32.mrf.mxu1 }
 0x1be   : > { %v438_v46 = vadd.f32 %v437_v31, %v1810_v44  ;;  %v527_v35 = vadd.f32 %v526_v22, %v1813_v45  ;;  %v453_v31 = vadd.f32 %v1877_v63, %v1810_v44 }
 0x1c0   : > { %v1015_v51 = vmax.f32 %v438_v46, 0.0  ;;  %v1016_v56 = vmax.f32 %v527_v35, 0.0  ;;  %1531 = vmatmul.msk.bf16.gmra.mxu2 %vm326_vm3, %v1792_v39  ;;  %1547 = vmatmul.msk.bf16.gmra.mxu3 %vm326_vm3, %v1792_v39  ;;  %v537_v39 = vadd.f32 %v1859_v27, %v1813_v45  ;;  %v542_v27 = vadd.f32 %v1879_v0, %v1813_v45 }
 0x1c1   : > { %v545_v46 = vadd.f32 %v1889_v13, %v1813_v45  ;;  %v1045_v0 = vmax.f32 %v451_v25, 0.0  ;;  %v2010_v13 = vperm.slane %v1807_v41, 4  ;;  %v552_v25 = vadd.f32 %v1919_v4, %v1813_v45 }
 0x1c2   : > { %v1132_v6 = vadd.f32 %v1131_v37, %v1015_v51  ;;  %v1169_v61 = vadd.f32 %v1168_v17, %v1016_v56  ;;  %v540_v17 = vadd.f32 %v1869_v53, %v1813_v45  ;;  %v1040_v35 = vmax.f32 %v537_v39, 0.0 }
 0x1c3   : > { %v1981_v62 = vpop.f32.mrf.mxu2  ;;  %v1983_v7 = vpop.f32.mrf.mxu3  ;;  %v547_v53 = vadd.f32 %v1899_v24, %v1813_v45  ;;  %v1051_v24 = vmax.f32 %v453_v31, 0.0  ;;  %v1052_v58 = vmax.f32 %v542_v27, 0.0  ;;  %v1058_v5 = vmax.f32 %v545_v46, 0.0 }
 0x1c4   : > { %v1133_v15 = vadd.f32 %v1132_v6, %v1021_v57  ;;  %v1170_v9 = vadd.f32 %v1169_v61, %v1022_v60  ;;  %v1046_v50 = vmax.f32 %v540_v17, 0.0  ;;  %v1063_v57 = vmax.f32 %v458_v52, 0.0 }
 0x1c5   : > { %v756_v14 = vpop.f32.mrf.mxu0  ;;  %v845_v37 = vpop.f32.mrf.mxu1  ;;  %v1064_v61 = vmax.f32 %v547_v53, 0.0  ;;  %v1069_v39 = vmax.f32 %v461_v12, 0.0  ;;  %v466_v17 = vadd.f32 %v1927_v19, %v1810_v44  ;;  %v557_v27 = vadd.f32 %v1939_v49, %v1813_v45 }
 0x1c6   : > { %v1134_v22 = vadd.f32 %v1133_v15, %v1027_v29  ;;  %v1171_v42 = vadd.f32 %v1170_v9, %v1028_v8  ;;  %v463_v15 = vadd.f32 %v1917_v3, %v1810_v44  ;;  %v757_v9 = vadd.f32 %v756_v14, %v2010_v13 }
 0x1c7   : > { %v468_v3 = vadd.f32 %v1937_v48, %v1810_v44  ;;  %v471_v49 = vadd.f32 %v1947_v33, %v1810_v44 }
 0x1c8   : > { %v1135_v47 = vadd.f32 %v1134_v22, %v1033_v10  ;;  %v1172_v63 = vadd.f32 %v1171_v42, %v1034_v16  ;;  %1564 = vmatmul.msk.bf16.gmra.mxu0 %vm326_vm3, %v1714_v26  ;;  %1580 = vmatmul.msk.bf16.gmra.mxu1 %vm326_vm3, %v1714_v26  ;;  %v846_v10 = vadd.f32 %v845_v37, %v2013_v23  ;;  %v1070_v42 = vmax.f32 %v550_v54, 0.0 }
 0x1c9   : > { %v555_v22 = vadd.f32 %v1929_v20, %v1813_v45  ;;  %v929_v19 = vmax.f32 %v757_v9, 0.0  ;;  %v1075_v52 = vmax.f32 %v463_v15, 0.0  ;;  %v2046_v54 = vperm.slane %v1807_v41, 2 }
 0x1ca   : > { %v1136_v51 = vadd.f32 %v1135_v47, %v1039_v11  ;;  %v1173_v56 = vadd.f32 %v1172_v63, %v1040_v35  ;;  %v930_v20 = vmax.f32 %v846_v10, 0.0  ;;  %v1076_v35 = vmax.f32 %v552_v25, 0.0 }
 0x1cb   : > { %v2015_v60 = vpop.f32.mrf.mxu2  ;;  %v2017_v6 = vpop.f32.mrf.mxu3  ;;  %v1081_v63 = vmax.f32 %v466_v17, 0.0  ;;  %v476_v9 = vadd.f32 %v1981_v62, %v1810_v44  ;;  %v565_v25 = vadd.f32 %v1983_v7, %v1813_v45 }
 0x1cc   : > { %v1137_v29 = vadd.f32 %v1136_v51, %v1045_v0  ;;  %v1174_v8 = vadd.f32 %v1173_v56, %v1046_v50  ;;  %v1082_v51 = vmax.f32 %v555_v22, 0.0  ;;  %v478_v7 = vadd.f32 %v2015_v60, %v1810_v44 }
 0x1cd   : > { %v758_v16 = vpop.f32.mrf.mxu0  ;;  %v847_v11 = vpop.f32.mrf.mxu1 }
 0x1ce   : > { %v1138_v31 = vadd.f32 %v1137_v29, %v1051_v24  ;;  %v1175_v55 = vadd.f32 %v1174_v8, %v1052_v58  ;;  %v759_v14 = vadd.f32 %v758_v16, %v2010_v13  ;;  %v848_v37 = vadd.f32 %v847_v11, %v2013_v23 }
 0x1cf   : > { %v473_v29 = vadd.f32 %v1957_v18, %v1810_v44  ;;  %v562_v8 = vadd.f32 %v1959_v21, %v1813_v45 }
 0x1d0   : > { %v1139_v4 = vadd.f32 %v1138_v31, %v1057_v59  ;;  %v1176_v43 = vadd.f32 %v1175_v55, %v1058_v5  ;;  %1532 = vmatmul.msk.bf16.gmra.mxu2 %vm326_vm3, %v1714_v26  ;;  %1548 = vmatmul.msk.bf16.gmra.mxu3 %vm326_vm3, %v1714_v26  ;;  %v935_v46 = vmax.f32 %v759_v14, 0.0  ;;  %v936_v48 = vmax.f32 %v848_v37, 0.0 }
 0x1d1   : > { %v560_v26 = vadd.f32 %v1949_v2, %v1813_v45  ;;  %v1087_v59 = vmax.f32 %v468_v3, 0.0  ;;  %v1088_v5 = vmax.f32 %v557_v27, 0.0  ;;  %v1099_v55 = vmax.f32 %v473_v29, 0.0 }
 0x1d2   : > { %v1140_v53 = vadd.f32 %v1139_v4, %v1063_v57  ;;  %v1177_v47 = vadd.f32 %v1176_v43, %v1064_v61  ;;  %v1266_v0 = vadd.f32 %v935_v46, %v929_v19  ;;  %v1303_v12 = vadd.f32 %v936_v48, %v930_v20 }
 0x1d3   : > { %v578_v50 = vpop.f32.mrf.mxu2  ;;  %v667_v24 = vpop.f32.mrf.mxu3  ;;  %v2049_v57 = vperm.slane %v1807_v41, 3  ;;  %v1094_v41 = vmax.f32 %v560_v26, 0.0  ;;  %v1100_v22 = vmax.f32 %v562_v8, 0.0  ;;  %v567_v37 = vadd.f32 %v2017_v6, %v1813_v45 }
 0x1d4   : > { %v1141_v56 = vadd.f32 %v1140_v53, %v1069_v39  ;;  %v1178_v58 = vadd.f32 %v1177_v47, %v1070_v42  ;;  %v1093_v39 = vmax.f32 %v471_v49, 0.0  ;;  %v579_v18 = vadd.f32 %v578_v50, %v2046_v54 }
 0x1d5   : > { %v761_v61 = vpop.f32.mrf.mxu0  ;;  %v850_v33 = vpop.f32.mrf.mxu1  ;;  %v668_v21 = vadd.f32 %v667_v24, %v2049_v57  ;;  %v1111_v6 = vmax.f32 %v478_v7, 0.0 }
 0x1d6   : > { %v1142_v15 = vadd.f32 %v1141_v56, %v1075_v52  ;;  %v1179_v2 = vadd.f32 %v1178_v58, %v1076_v35  ;;  %v762_v10 = vadd.f32 %v761_v61, %v2010_v13  ;;  %v851_v16 = vadd.f32 %v850_v33, %v2013_v23 }
 0x1d7   : > { %v1105_v52 = vmax.f32 %v476_v9, 0.0  ;;  %v1106_v35 = vmax.f32 %v565_v25, 0.0  ;;  %v927_v53 = vmax.f32 %v579_v18, 0.0  ;;  %v928_v47 = vmax.f32 %v668_v21, 0.0 }
 0x1d8   : > { %v1143_v11 = vadd.f32 %v1142_v15, %v1081_v63  ;;  %v1180_v17 = vadd.f32 %v1179_v2, %v1082_v51  ;;  %1565 = vmatmul.msk.bf16.gmra.mxu0 %vm326_vm3, %v1726_v28  ;;  %1581 = vmatmul.msk.bf16.gmra.mxu1 %vm326_vm3, %v1726_v28  ;;  %v941_v62 = vmax.f32 %v762_v10, 0.0  ;;  %v942_v31 = vmax.f32 %v851_v16, 0.0 }
 0x1da   : > { %v1144_v3 = vadd.f32 %v1143_v11, %v1087_v59  ;;  %v1181_v14 = vadd.f32 %v1180_v17, %v1088_v5  ;;  %v1267_v42 = vadd.f32 %v1266_v0, %v941_v62  ;;  %v1304_v27 = vadd.f32 %v1303_v12, %v942_v31 }
 0x1db   : > { %v580_v4 = vpop.f32.mrf.mxu2  ;;  %v669_v43 = vpop.f32.mrf.mxu3  ;;  %v1112_v0 = vmax.f32 %v567_v37, 0.0 }
 0x1dc   : > { %v1145_v19 = vadd.f32 %v1144_v3, %v1093_v39  ;;  %v1182_v20 = vadd.f32 %v1181_v14, %v1094_v41  ;;  %v581_v46 = vadd.f32 %v580_v4, %v2046_v54  ;;  %v670_v48 = vadd.f32 %v669_v43, %v2049_v57 }
 0x1dd   : > { %v763_v63 = vpop.f32.mrf.mxu0  ;;  %v852_v49 = vpop.f32.mrf.mxu1 }
 0x1de   : > { %v1146_v44 = vadd.f32 %v1145_v19, %v1099_v55  ;;  %v1183_v60 = vadd.f32 %v1182_v20, %v1100_v22  ;;  %v933_v50 = vmax.f32 %v581_v46, 0.0  ;;  %v934_v45 = vmax.f32 %v670_v48, 0.0 }
 0x1df   : > { %v764_v12 = vadd.f32 %v763_v63, %v2010_v13  ;;  %v853_v24 = vadd.f32 %v852_v49, %v2013_v23 }
 0x1e0   : > { %v1147_v51 = vadd.f32 %v1146_v44, %v1105_v52  ;;  %v1184_v26 = vadd.f32 %v1183_v60, %v1106_v35  ;;  %v1192_v56 = vadd.f32 %v933_v50, %v927_v53  ;;  %v1229_v58 = vadd.f32 %v934_v45, %v928_v47  ;;  %1533 = vmatmul.msk.bf16.gmra.mxu2 %vm326_vm3, %v1726_v28 }
 0x1e1   : > { %v947_v59 = vmax.f32 %v764_v12, 0.0  ;;  %v948_v5 = vmax.f32 %v853_v24, 0.0  ;;  %1549 = vmatmul.msk.bf16.gmra.mxu3 %vm326_vm3, %v1726_v28 }
 0x1e2   : > { %v1148_v61 = vadd.f32 %v1147_v51, %v1111_v6  ;;  %v1185_v33 = vadd.f32 %v1184_v26, %v1112_v0 }
 0x1e3   : > { %v1268_v29 = vadd.f32 %v1267_v42, %v947_v59  ;;  %v1305_v8 = vadd.f32 %v1304_v27, %v948_v5  ;;  %v583_v15 = vpop.f32.mrf.mxu2  ;;  %v672_v2 = vpop.f32.mrf.mxu3 }
 0x1e4   : > { %v1149_v39 = vrot.slane %v1148_v61, 4  ;;  %v1186_v9 = vrot.slane %v1185_v33, 4  ;;  %v584_v10 = vadd.f32 %v583_v15, %v2046_v54  ;;  %v673_v16 = vadd.f32 %v672_v2, %v2049_v57 }
 0x1e5   : > { %v766_v41 = vpop.f32.mrf.mxu0  ;;  %v855_v11 = vpop.f32.mrf.mxu1 }
 0x1e6   : > { %v1150_v25 = vadd.f32 %v1149_v39, %v1148_v61  ;;  %v1187_v17 = vadd.f32 %v1186_v9, %v1185_v33  ;;  %v939_v18 = vmax.f32 %v584_v10, 0.0  ;;  %v940_v21 = vmax.f32 %v673_v16, 0.0 }
 0x1e7   : > { %v767_v28 = vadd.f32 %v766_v41, %v2010_v13  ;;  %v856_v62 = vadd.f32 %v855_v11, %v2013_v23 }
 0x1e8   : > { %v1151_v31 = vrot.slane %v1150_v25, 2  ;;  %v1188_v55 = vrot.slane %v1187_v17, 2  ;;  %v1193_v22 = vadd.f32 %v1192_v56, %v939_v18  ;;  %v1230_v3 = vadd.f32 %v1229_v58, %v940_v21  ;;  %1566 = vmatmul.msk.bf16.gmra.mxu0 %vm326_vm3, %v1738_v30  ;;  %1582 = vmatmul.msk.bf16.gmra.mxu1 %vm326_vm3, %v1738_v30 }
 0x1e9   : > { %v953_v14 = vmax.f32 %v767_v28, 0.0  ;;  %v954_v7 = vmax.f32 %v856_v62, 0.0 }
 0x1ea   : > { %v1152_v37 = vadd.f32 %v1151_v31, %v1150_v25  ;;  %v1189_v42 = vadd.f32 %v1188_v55, %v1187_v17 }
 0x1eb   : > { %v1269_v27 = vadd.f32 %v1268_v29, %v953_v14  ;;  %v1306_v4 = vadd.f32 %v1305_v8, %v954_v7  ;;  %v585_v43 = vpop.f32.mrf.mxu2  ;;  %v674_v19 = vpop.f32.mrf.mxu3 }
 0x1ec   : > { %v1153_v20 = vrot.slane %v1152_v37, 1  ;;  %v1190_v46 = vrot.slane %v1189_v42, 1  ;;  %v586_v48 = vadd.f32 %v585_v43, %v2046_v54  ;;  %v675_v52 = vadd.f32 %v674_v19, %v2049_v57 }
 0x1ed   : > { %v768_v35 = vpop.f32.mrf.mxu0  ;;  %v857_v53 = vpop.f32.mrf.mxu1 }
 0x1ee   : > { %v1191_v47 = vadd.f32 %v1190_v46, %v1189_v42  ;;  %v945_v63 = vmax.f32 %v586_v48, 0.0  ;;  %v946_v49 = vmax.f32 %v675_v52, 0.0  ;;  %v769_v44 = vadd.f32 %v768_v35, %v2010_v13 }
 0x1ef   : > { %v858_v60 = vadd.f32 %v857_v53, %v2013_v23  ;;  %v1154_v50 = vadd.f32 %v1153_v20, %v1152_v37 }
 0x1f0   : > { %v1346_v45 = vrot.slane %v1191_v47, 7  ;;  %v1194_v6 = vadd.f32 %v1193_v22, %v945_v63  ;;  %v1231_v0 = vadd.f32 %v1230_v3, %v946_v49  ;;  %1534 = vmatmul.msk.bf16.gmra.mxu2 %vm326_vm3, %v1738_v30  ;;  %v959_v12 = vmax.f32 %v769_v44, 0.0 }
 0x1f1   : > { %v960_v24 = vmax.f32 %v858_v60, 0.0  ;;  %1550 = vmatmul.msk.bf16.gmra.mxu3 %vm326_vm3, %v1738_v30 }
 0x1f2   : > { %v2096_v51 = vsel %vm375_vm1, %v1154_v50, %v1346_v45  ;;  %v1270_v26 = vadd.f32 %v1269_v27, %v959_v12 }
 0x1f3   : > { %v1307_v56 = vadd.f32 %v1306_v4, %v960_v24  ;;  %v588_v58 = vpop.f32.mrf.mxu2  ;;  %v677_v59 = vpop.f32.mrf.mxu3 }
 0x1f4   : > { %v589_v5 = vadd.f32 %v588_v58, %v2046_v54  ;;  %v678_v61 = vadd.f32 %v677_v59, %v2049_v57 }
 0x1f5   : > { %v771_v33 = vpop.f32.mrf.mxu0  ;;  %v860_v29 = vpop.f32.mrf.mxu1 }
 0x1f6   : > { %v951_v8 = vmax.f32 %v589_v5, 0.0  ;;  %v952_v15 = vmax.f32 %v678_v61, 0.0  ;;  %v772_v2 = vadd.f32 %v771_v33, %v2010_v13  ;;  %v861_v39 = vadd.f32 %v860_v29, %v2013_v23 }
 0x1f8   : > { %v1195_v30 = vadd.f32 %v1194_v6, %v951_v8  ;;  %v1232_v9 = vadd.f32 %v1231_v0, %v952_v15  ;;  %v965_v10 = vmax.f32 %v772_v2, 0.0  ;;  %v966_v16 = vmax.f32 %v861_v39, 0.0  ;;  %1567 = vmatmul.msk.bf16.gmra.mxu0 %vm326_vm3, %v1750_v32  ;;  %1583 = vmatmul.msk.bf16.gmra.mxu1 %vm326_vm3, %v1750_v32 }
 0x1fa   : > { %v1271_v41 = vadd.f32 %v1270_v26, %v965_v10  ;;  %v1308_v11 = vadd.f32 %v1307_v56, %v966_v16 }
 0x1fb   : > { %v590_v25 = vpop.f32.mrf.mxu2  ;;  %v679_v17 = vpop.f32.mrf.mxu3 }
 0x1fc   : > { %v591_v18 = vadd.f32 %v590_v25, %v2046_v54  ;;  %v680_v21 = vadd.f32 %v679_v17, %v2049_v57 }
 0x1fd   : > { %v773_v28 = vpop.f32.mrf.mxu0  ;;  %v862_v62 = vpop.f32.mrf.mxu1 }
 0x1fe   : > { %v957_v31 = vmax.f32 %v591_v18, 0.0  ;;  %v958_v55 = vmax.f32 %v680_v21, 0.0  ;;  %v774_v22 = vadd.f32 %v773_v28, %v2010_v13  ;;  %v863_v3 = vadd.f32 %v862_v62, %v2013_v23 }
 0x200   : > { %v1196_v14 = vadd.f32 %v1195_v30, %v957_v31  ;;  %v1233_v7 = vadd.f32 %v1232_v9, %v958_v55  ;;  %v971_v37 = vmax.f32 %v774_v22, 0.0  ;;  %v972_v42 = vmax.f32 %v863_v3, 0.0  ;;  %1535 = vmatmul.msk.bf16.gmra.mxu2 %vm326_vm3, %v1750_v32 }
 0x201   : > { %1551 = vmatmul.msk.bf16.gmra.mxu3 %vm326_vm3, %v1750_v32 }
 0x202   : > { %v1272_v27 = vadd.f32 %v1271_v41, %v971_v37  ;;  %v1309_v4 = vadd.f32 %v1308_v11, %v972_v42 }
 0x203   : > { %v593_v43 = vpop.f32.mrf.mxu2  ;;  %v682_v19 = vpop.f32.mrf.mxu3 }
 0x204   : > { %v594_v20 = vadd.f32 %v593_v43, %v2046_v54  ;;  %v683_v46 = vadd.f32 %v682_v19, %v2049_v57 }
 0x205   : > { %v776_v48 = vpop.f32.mrf.mxu0  ;;  %v865_v52 = vpop.f32.mrf.mxu1 }
 0x206   : > { %v963_v35 = vmax.f32 %v594_v20, 0.0  ;;  %v964_v53 = vmax.f32 %v683_v46, 0.0  ;;  %v777_v47 = vadd.f32 %v776_v48, %v2010_v13  ;;  %v866_v63 = vadd.f32 %v865_v52, %v2013_v23 }
 0x208   : > { %v1197_v49 = vadd.f32 %v1196_v14, %v963_v35  ;;  %v1234_v44 = vadd.f32 %v1233_v7, %v964_v53  ;;  %v977_v60 = vmax.f32 %v777_v47, 0.0  ;;  %v978_v32 = vmax.f32 %v866_v63, 0.0  ;;  %1568 = vmatmul.msk.bf16.gmra.mxu0 %vm326_vm3, %v1762_v34  ;;  %1584 = vmatmul.msk.bf16.gmra.mxu1 %vm326_vm3, %v1762_v34 }
 0x20a   : > { %v1273_v50 = vadd.f32 %v1272_v27, %v977_v60  ;;  %v1310_v45 = vadd.f32 %v1309_v4, %v978_v32 }
 0x20b   : > { %v595_v6 = vpop.f32.mrf.mxu2  ;;  %v684_v0 = vpop.f32.mrf.mxu3 }
 0x20c   : > { %v596_v12 = vadd.f32 %v595_v6, %v2046_v54  ;;  %v685_v24 = vadd.f32 %v684_v0, %v2049_v57 }
 0x20d   : > { %v778_v26 = vpop.f32.mrf.mxu0  ;;  %v867_v56 = vpop.f32.mrf.mxu1 }
 0x20e   : > { %v969_v58 = vmax.f32 %v596_v12, 0.0  ;;  %v970_v59 = vmax.f32 %v685_v24, 0.0  ;;  %v779_v5 = vadd.f32 %v778_v26, %v2010_v13  ;;  %v868_v61 = vadd.f32 %v867_v56, %v2013_v23 }
 0x210   : > { %v1198_v33 = vadd.f32 %v1197_v49, %v969_v58  ;;  %v1235_v29 = vadd.f32 %v1234_v44, %v970_v59  ;;  %v983_v8 = vmax.f32 %v779_v5, 0.0  ;;  %v984_v15 = vmax.f32 %v868_v61, 0.0  ;;  %1536 = vmatmul.msk.bf16.gmra.mxu2 %vm326_vm3, %v1762_v34 }
 0x211   : > { %1552 = vmatmul.msk.bf16.gmra.mxu3 %vm326_vm3, %v1762_v34 }
 0x212   : > { %v1274_v2 = vadd.f32 %v1273_v50, %v983_v8  ;;  %v1311_v39 = vadd.f32 %v1310_v45, %v984_v15 }
 0x213   : > { %v598_v30 = vpop.f32.mrf.mxu2  ;;  %v687_v9 = vpop.f32.mrf.mxu3 }
 0x214   : > { %v599_v10 = vadd.f32 %v598_v30, %v2046_v54  ;;  %v688_v16 = vadd.f32 %v687_v9, %v2049_v57 }
 0x215   : > { %v781_v41 = vpop.f32.mrf.mxu0  ;;  %v870_v11 = vpop.f32.mrf.mxu1 }
 0x216   : > { %v975_v25 = vmax.f32 %v599_v10, 0.0  ;;  %v976_v17 = vmax.f32 %v688_v16, 0.0  ;;  %v782_v18 = vadd.f32 %v781_v41, %v2010_v13  ;;  %v871_v21 = vadd.f32 %v870_v11, %v2013_v23 }
 0x218   : > { %v1199_v28 = vadd.f32 %v1198_v33, %v975_v25  ;;  %v1236_v62 = vadd.f32 %v1235_v29, %v976_v17  ;;  %v989_v31 = vmax.f32 %v782_v18, 0.0  ;;  %v990_v34 = vmax.f32 %v871_v21, 0.0  ;;  %1569 = vmatmul.msk.bf16.gmra.mxu0 %vm326_vm3, %v1774_v36  ;;  %1585 = vmatmul.msk.bf16.gmra.mxu1 %vm326_vm3, %v1774_v36 }
 0x21a   : > { %v1275_v55 = vadd.f32 %v1274_v2, %v989_v31  ;;  %v1312_v22 = vadd.f32 %v1311_v39, %v990_v34 }
 0x21b   : > { %v600_v3 = vpop.f32.mrf.mxu2  ;;  %v689_v14 = vpop.f32.mrf.mxu3 }
 0x21c   : > { %v601_v7 = vadd.f32 %v600_v3, %v2046_v54  ;;  %v690_v37 = vadd.f32 %v689_v14, %v2049_v57 }
 0x21d   : > { %v783_v42 = vpop.f32.mrf.mxu0  ;;  %v872_v27 = vpop.f32.mrf.mxu1 }
 0x21e   : > { %v981_v4 = vmax.f32 %v601_v7, 0.0  ;;  %v982_v43 = vmax.f32 %v690_v37, 0.0  ;;  %v784_v19 = vadd.f32 %v783_v42, %v2010_v13  ;;  %v873_v20 = vadd.f32 %v872_v27, %v2013_v23 }
 0x220   : > { %v1200_v46 = vadd.f32 %v1199_v28, %v981_v4  ;;  %v1237_v48 = vadd.f32 %v1236_v62, %v982_v43  ;;  %v995_v52 = vmax.f32 %v784_v19, 0.0  ;;  %v996_v35 = vmax.f32 %v873_v20, 0.0  ;;  %1537 = vmatmul.msk.bf16.gmra.mxu2 %vm326_vm3, %v1774_v36 }
 0x221   : > { %1553 = vmatmul.msk.bf16.gmra.mxu3 %vm326_vm3, %v1774_v36 }
 0x222   : > { %v1276_v53 = vadd.f32 %v1275_v55, %v995_v52  ;;  %v1313_v47 = vadd.f32 %v1312_v22, %v996_v35 }
 0x223   : > { %v603_v63 = vpop.f32.mrf.mxu2  ;;  %v692_v49 = vpop.f32.mrf.mxu3 }
 0x224   : > { %v604_v44 = vadd.f32 %v603_v63, %v2046_v54  ;;  %v693_v60 = vadd.f32 %v692_v49, %v2049_v57 }
 0x225   : > { %v786_v32 = vpop.f32.mrf.mxu0  ;;  %v875_v50 = vpop.f32.mrf.mxu1 }
 0x226   : > { %v987_v45 = vmax.f32 %v604_v44, 0.0  ;;  %v988_v6 = vmax.f32 %v693_v60, 0.0  ;;  %v787_v0 = vadd.f32 %v786_v32, %v2010_v13  ;;  %v876_v12 = vadd.f32 %v875_v50, %v2013_v23 }
 0x228   : > { %v1201_v24 = vadd.f32 %v1200_v46, %v987_v45  ;;  %v1238_v26 = vadd.f32 %v1237_v48, %v988_v6  ;;  %v1001_v56 = vmax.f32 %v787_v0, 0.0  ;;  %v1002_v36 = vmax.f32 %v876_v12, 0.0  ;;  %1570 = vmatmul.msk.bf16.gmra.mxu0 %vm326_vm3, %v1786_v38  ;;  %1586 = vmatmul.msk.bf16.gmra.mxu1 %vm326_vm3, %v1786_v38 }
 0x22a   : > { %v1277_v58 = vadd.f32 %v1276_v53, %v1001_v56  ;;  %v1314_v59 = vadd.f32 %v1313_v47, %v1002_v36 }
 0x22b   : > { %v605_v5 = vpop.f32.mrf.mxu2  ;;  %v694_v61 = vpop.f32.mrf.mxu3 }
 0x22c   : > { %v606_v33 = vadd.f32 %v605_v5, %v2046_v54  ;;  %v695_v29 = vadd.f32 %v694_v61, %v2049_v57 }
 0x22d   : > { %v788_v8 = vpop.f32.mrf.mxu0  ;;  %v877_v15 = vpop.f32.mrf.mxu1 }
 0x22e   : > { %v993_v2 = vmax.f32 %v606_v33, 0.0  ;;  %v994_v39 = vmax.f32 %v695_v29, 0.0  ;;  %v789_v30 = vadd.f32 %v788_v8, %v2010_v13  ;;  %v878_v9 = vadd.f32 %v877_v15, %v2013_v23 }
 0x230   : > { %v1202_v10 = vadd.f32 %v1201_v24, %v993_v2  ;;  %v1239_v16 = vadd.f32 %v1238_v26, %v994_v39  ;;  %v1007_v41 = vmax.f32 %v789_v30, 0.0  ;;  %v1008_v11 = vmax.f32 %v878_v9, 0.0  ;;  %1538 = vmatmul.msk.bf16.gmra.mxu2 %vm326_vm3, %v1786_v38 }
 0x231   : > { %1554 = vmatmul.msk.bf16.gmra.mxu3 %vm326_vm3, %v1786_v38 }
 0x232   : > { %v1278_v25 = vadd.f32 %v1277_v58, %v1007_v41  ;;  %v1315_v17 = vadd.f32 %v1314_v59, %v1008_v11 }
 0x233   : > { %v608_v18 = vpop.f32.mrf.mxu2  ;;  %v697_v21 = vpop.f32.mrf.mxu3 }
 0x234   : > { %v609_v28 = vadd.f32 %v608_v18, %v2046_v54  ;;  %v698_v62 = vadd.f32 %v697_v21, %v2049_v57 }
 0x235   : > { %v791_v31 = vpop.f32.mrf.mxu0  ;;  %v880_v34 = vpop.f32.mrf.mxu1 }
 0x236   : > { %v999_v55 = vmax.f32 %v609_v28, 0.0  ;;  %v1000_v22 = vmax.f32 %v698_v62, 0.0  ;;  %v792_v3 = vadd.f32 %v791_v31, %v2010_v13  ;;  %v881_v14 = vadd.f32 %v880_v34, %v2013_v23 }
 0x238   : > { %v1203_v7 = vadd.f32 %v1202_v10, %v999_v55  ;;  %v1240_v37 = vadd.f32 %v1239_v16, %v1000_v22  ;;  %v1013_v42 = vmax.f32 %v792_v3, 0.0  ;;  %v1014_v38 = vmax.f32 %v881_v14, 0.0  ;;  %1571 = vmatmul.msk.bf16.gmra.mxu0 %vm326_vm3, %v1798_v40  ;;  %1587 = vmatmul.msk.bf16.gmra.mxu1 %vm326_vm3, %v1798_v40 }
 0x23a   : > { %v1279_v27 = vadd.f32 %v1278_v25, %v1013_v42  ;;  %v1316_v4 = vadd.f32 %v1315_v17, %v1014_v38 }
 0x23b   : > { %v610_v43 = vpop.f32.mrf.mxu2  ;;  %v699_v19 = vpop.f32.mrf.mxu3 }
 0x23c   : > { %v611_v20 = vadd.f32 %v610_v43, %v2046_v54  ;;  %v700_v46 = vadd.f32 %v699_v19, %v2049_v57 }
 0x23d   : > { %v793_v48 = vpop.f32.mrf.mxu0  ;;  %v882_v52 = vpop.f32.mrf.mxu1 }
 0x23e   : > { %v1005_v35 = vmax.f32 %v611_v20, 0.0  ;;  %v1006_v53 = vmax.f32 %v700_v46, 0.0  ;;  %v794_v47 = vadd.f32 %v793_v48, %v2010_v13  ;;  %v883_v63 = vadd.f32 %v882_v52, %v2013_v23 }
 0x240   : > { %v1204_v49 = vadd.f32 %v1203_v7, %v1005_v35  ;;  %v1241_v44 = vadd.f32 %v1240_v37, %v1006_v53  ;;  %v1019_v60 = vmax.f32 %v794_v47, 0.0  ;;  %v1020_v32 = vmax.f32 %v883_v63, 0.0  ;;  %1539 = vmatmul.msk.bf16.gmra.mxu2 %vm326_vm3, %v1798_v40 }
 0x241   : > { %1555 = vmatmul.msk.bf16.gmra.mxu3 %vm326_vm3, %v1798_v40 }
 0x242   : > { %v1280_v50 = vadd.f32 %v1279_v27, %v1019_v60  ;;  %v1317_v45 = vadd.f32 %v1316_v4, %v1020_v32 }
 0x243   : > { %v613_v6 = vpop.f32.mrf.mxu2  ;;  %v702_v0 = vpop.f32.mrf.mxu3 }
 0x244   : > { %v614_v12 = vadd.f32 %v613_v6, %v2046_v54  ;;  %v703_v24 = vadd.f32 %v702_v0, %v2049_v57 }
 0x245   : > { %v796_v26 = vpop.f32.mrf.mxu0  ;;  %v885_v56 = vpop.f32.mrf.mxu1 }
 0x246   : > { %v1011_v36 = vmax.f32 %v614_v12, 0.0  ;;  %v1012_v58 = vmax.f32 %v703_v24, 0.0  ;;  %v797_v59 = vadd.f32 %v796_v26, %v2010_v13  ;;  %v886_v5 = vadd.f32 %v885_v56, %v2013_v23 }
 0x248   : > { %v1205_v61 = vadd.f32 %v1204_v49, %v1011_v36  ;;  %v1242_v33 = vadd.f32 %v1241_v44, %v1012_v58  ;;  %v1025_v29 = vmax.f32 %v797_v59, 0.0  ;;  %v1026_v40 = vmax.f32 %v886_v5, 0.0 }
 0x24a   : > { %v1281_v8 = vadd.f32 %v1280_v50, %v1025_v29  ;;  %v1318_v15 = vadd.f32 %v1317_v45, %v1026_v40 }
 0x24b   : > { %v615_v2 = vpop.f32.mrf.mxu2  ;;  %v704_v39 = vpop.f32.mrf.mxu3 }
 0x24c   : > { %v616_v30 = vadd.f32 %v615_v2, %v2046_v54  ;;  %v705_v9 = vadd.f32 %v704_v39, %v2049_v57 }
 0x24d   : > { %v798_v10 = vpop.f32.mrf.mxu0  ;;  %v887_v16 = vpop.f32.mrf.mxu1 }
 0x24e   : > { %v1017_v41 = vmax.f32 %v616_v30, 0.0  ;;  %v1018_v11 = vmax.f32 %v705_v9, 0.0  ;;  %v799_v25 = vadd.f32 %v798_v10, %v2010_v13  ;;  %v888_v17 = vadd.f32 %v887_v16, %v2013_v23 }
 0x250   : > { %v1206_v18 = vadd.f32 %v1205_v61, %v1017_v41  ;;  %v1243_v21 = vadd.f32 %v1242_v33, %v1018_v11  ;;  %v1031_v28 = vmax.f32 %v799_v25, 0.0  ;;  %v1032_v62 = vmax.f32 %v888_v17, 0.0 }
 0x252   : > { %v1282_v31 = vadd.f32 %v1281_v8, %v1031_v28  ;;  %v1319_v34 = vadd.f32 %v1318_v15, %v1032_v62 }
 0x253   : > { %v618_v55 = vpop.f32.mrf.mxu2  ;;  %v707_v22 = vpop.f32.mrf.mxu3 }
 0x254   : > { %v619_v3 = vadd.f32 %v618_v55, %v2046_v54  ;;  %v708_v14 = vadd.f32 %v707_v22, %v2049_v57 }
 0x255   : > { %v801_v7 = vpop.f32.mrf.mxu0  ;;  %v890_v37 = vpop.f32.mrf.mxu1 }
 0x256   : > { %v1023_v42 = vmax.f32 %v619_v3, 0.0  ;;  %v1024_v38 = vmax.f32 %v708_v14, 0.0  ;;  %v802_v27 = vadd.f32 %v801_v7, %v2010_v13  ;;  %v891_v4 = vadd.f32 %v890_v37, %v2013_v23 }
 0x258   : > { %v1207_v43 = vadd.f32 %v1206_v18, %v1023_v42  ;;  %v1244_v19 = vadd.f32 %v1243_v21, %v1024_v38  ;;  %v1037_v20 = vmax.f32 %v802_v27, 0.0  ;;  %v1038_v46 = vmax.f32 %v891_v4, 0.0 }
 0x25a   : > { %v1283_v48 = vadd.f32 %v1282_v31, %v1037_v20  ;;  %v1320_v52 = vadd.f32 %v1319_v34, %v1038_v46 }
 0x25b   : > { %v620_v35 = vpop.f32.mrf.mxu2  ;;  %v709_v53 = vpop.f32.mrf.mxu3 }
 0x25c   : > { %v621_v47 = vadd.f32 %v620_v35, %v2046_v54  ;;  %v710_v63 = vadd.f32 %v709_v53, %v2049_v57 }
 0x25d   : > { %v803_v49 = vpop.f32.mrf.mxu0  ;;  %v892_v44 = vpop.f32.mrf.mxu1 }
 0x25e   : > { %v1029_v60 = vmax.f32 %v621_v47, 0.0  ;;  %v1030_v32 = vmax.f32 %v710_v63, 0.0  ;;  %v804_v50 = vadd.f32 %v803_v49, %v2010_v13  ;;  %v893_v45 = vadd.f32 %v892_v44, %v2013_v23 }
 0x260   : > { %v1208_v6 = vadd.f32 %v1207_v43, %v1029_v60  ;;  %v1245_v0 = vadd.f32 %v1244_v19, %v1030_v32  ;;  %v1043_v12 = vmax.f32 %v804_v50, 0.0  ;;  %v1044_v24 = vmax.f32 %v893_v45, 0.0 }
 0x262   : > { %v1284_v26 = vadd.f32 %v1283_v48, %v1043_v12  ;;  %v1321_v56 = vadd.f32 %v1320_v52, %v1044_v24 }
 0x263   : > { %v623_v36 = vpop.f32.mrf.mxu2 }
 0x264   : > { %v624_v58 = vadd.f32 %v623_v36, %v2046_v54  ;;  %v712_v59 = vpop.f32.mrf.mxu3 }
 0x265   : > { %v713_v5 = vadd.f32 %v712_v59, %v2049_v57  ;;  %v806_v61 = vpop.f32.mrf.mxu0  ;;  %v895_v33 = vpop.f32.mrf.mxu1 }
 0x266   : > { %v1035_v29 = vmax.f32 %v624_v58, 0.0  ;;  %v807_v40 = vadd.f32 %v806_v61, %v2010_v13  ;;  %v896_v8 = vadd.f32 %v895_v33, %v2013_v23 }
 0x267   : > { %v1036_v15 = vmax.f32 %v713_v5, 0.0 }
 0x268   : > { %v1209_v2 = vadd.f32 %v1208_v6, %v1035_v29  ;;  %v1049_v39 = vmax.f32 %v807_v40, 0.0  ;;  %v1050_v30 = vmax.f32 %v896_v8, 0.0 }
 0x269   : > { %v1246_v9 = vadd.f32 %v1245_v0, %v1036_v15 }
 0x26a   : > { %v2198_v10 = vadd.f32 %v1284_v26, %v1049_v39  ;;  %v2200_v16 = vadd.f32 %v1321_v56, %v1050_v30 }
 0x26b   : > { %v625_v41 = vpop.f32.mrf.mxu2 }
 0x26c   : > { %v626_v11 = vadd.f32 %v625_v41, %v2046_v54  ;;  %v714_v25 = vpop.f32.mrf.mxu3 }
 0x26d   : > { %v715_v17 = vadd.f32 %v714_v25, %v2049_v57  ;;  %v808_v18 = vpop.f32.mrf.mxu0  ;;  %v897_v21 = vpop.f32.mrf.mxu1 }
 0x26e   : > { %v1041_v28 = vmax.f32 %v626_v11, 0.0  ;;  %v809_v59 = vadd.f32 %v808_v18, %v2010_v13  ;;  %v898_v5 = vadd.f32 %v897_v21, %v2013_v23 }
 0x26f   : > { %v1042_v62 = vmax.f32 %v715_v17, 0.0 }
 0x270   : > { %v1210_v31 = vadd.f32 %v1209_v2, %v1041_v28  ;;  %v1055_v29 = vmax.f32 %v809_v59, 0.0  ;;  %v1056_v15 = vmax.f32 %v898_v5, 0.0 }
 0x271   : > { %v1247_v34 = vadd.f32 %v1246_v9, %v1042_v62 }
 0x272   : > { %v1286_v28 = vadd.f32 %v2198_v10, %v1055_v29 }
 0x273   : > { %v628_v55 = vpop.f32.mrf.mxu2 }
 0x274   : > { %v629_v22 = vadd.f32 %v628_v55, %v2046_v54  ;;  %v717_v3 = vpop.f32.mrf.mxu3  ;;  %v1323_v55 = vadd.f32 %v2200_v16, %v1056_v15 }
 0x275   : > { %v718_v14 = vadd.f32 %v717_v3, %v2049_v57  ;;  %v811_v7 = vpop.f32.mrf.mxu0  ;;  %v900_v37 = vpop.f32.mrf.mxu1 }
 0x276   : > { %v1047_v42 = vmax.f32 %v629_v22, 0.0  ;;  %v812_v61 = vadd.f32 %v811_v7, %v2010_v13  ;;  %v901_v33 = vadd.f32 %v900_v37, %v2013_v23 }
 0x277   : > { %v1048_v38 = vmax.f32 %v718_v14, 0.0 }
 0x278   : > { %v1211_v27 = vadd.f32 %v1210_v31, %v1047_v42  ;;  %v1061_v30 = vmax.f32 %v812_v61, 0.0  ;;  %v1062_v11 = vmax.f32 %v901_v33, 0.0 }
 0x279   : > { %v1248_v4 = vadd.f32 %v1247_v34, %v1048_v38 }
 0x27a   : > { %v1287_v14 = vadd.f32 %v1286_v28, %v1061_v30  ;;  %v1324_v38 = vadd.f32 %v1323_v55, %v1062_v11 }
 0x27b   : > { %v630_v43 = vpop.f32.mrf.mxu2 }
 0x27c   : > { %v719_v19 = vpop.f32.mrf.mxu3  ;;  %v631_v40 = vadd.f32 %v630_v43, %v2046_v54 }
 0x27d   : > { %v813_v20 = vpop.f32.mrf.mxu0  ;;  %v902_v46 = vpop.f32.mrf.mxu1  ;;  %v720_v8 = vadd.f32 %v719_v19, %v2049_v57 }
 0x27e   : > { %v814_v2 = vadd.f32 %v813_v20, %v2010_v13  ;;  %v903_v9 = vadd.f32 %v902_v46, %v2013_v23  ;;  %v1053_v62 = vmax.f32 %v631_v40, 0.0 }
 0x27f   : > { %v1054_v31 = vmax.f32 %v720_v8, 0.0 }
 0x280   : > { %v1067_v22 = vmax.f32 %v814_v2, 0.0  ;;  %v1068_v7 = vmax.f32 %v903_v9, 0.0  ;;  %v1212_v20 = vadd.f32 %v1211_v27, %v1053_v62 }
 0x281   : > { %v1249_v46 = vadd.f32 %v1248_v4, %v1054_v31 }
 0x282   : > { %v1288_v16 = vadd.f32 %v1287_v14, %v1067_v22 }
 0x283   : > { %v633_v48 = vpop.f32.mrf.mxu2 }
 0x284   : > { %v722_v52 = vpop.f32.mrf.mxu3  ;;  %v634_v25 = vadd.f32 %v633_v48, %v2046_v54 }
 0x285   : > { %v816_v35 = vpop.f32.mrf.mxu0  ;;  %v905_v53 = vpop.f32.mrf.mxu1  ;;  %v723_v37 = vadd.f32 %v722_v52, %v2049_v57  ;;  %v1325_v52 = vadd.f32 %v1324_v38, %v1068_v7 }
 0x286   : > { %v817_v17 = vadd.f32 %v816_v35, %v2010_v13  ;;  %v906_v34 = vadd.f32 %v905_v53, %v2013_v23  ;;  %v1059_v43 = vmax.f32 %v634_v25, 0.0 }
 0x288   : > { %v1073_v19 = vmax.f32 %v817_v17, 0.0  ;;  %v1074_v48 = vmax.f32 %v906_v34, 0.0  ;;  %v1213_v27 = vadd.f32 %v1212_v20, %v1059_v43 }
 0x28a   : > { %v1289_v4 = vadd.f32 %v1288_v16, %v1073_v19 }
 0x28b   : > { %v635_v47 = vpop.f32.mrf.mxu2 }
 0x28c   : > { %v2206_v63 = vpop.f32.mrf.mxu3  ;;  %v636_v53 = vadd.f32 %v635_v47, %v2046_v54  ;;  %v1326_v47 = vadd.f32 %v1325_v52, %v1074_v48 }
 0x28d   : > { %v818_v49 = vpop.f32.mrf.mxu0  ;;  %v907_v44 = vpop.f32.mrf.mxu1 }
 0x28e   : > { %v819_v3 = vadd.f32 %v818_v49, %v2010_v13  ;;  %v908_v42 = vadd.f32 %v907_v44, %v2013_v23  ;;  %v1060_v44 = vmax.f32 %v723_v37, 0.0  ;;  %v1065_v30 = vmax.f32 %v636_v53, 0.0 }
 0x290   : > { %v1079_v49 = vmax.f32 %v819_v3, 0.0  ;;  %v1080_v61 = vmax.f32 %v908_v42, 0.0  ;;  %v1250_v62 = vadd.f32 %v1249_v46, %v1060_v44 }
 0x292   : > { %v1290_v9 = vadd.f32 %v1289_v4, %v1079_v49  ;;  %v1327_v25 = vadd.f32 %v1326_v47, %v1080_v61 }
 0x293   : > { %v2208_v60 = vpop.f32.mrf.mxu2 }
 0x294   : > { %v2210_v32 = vpop.f32.mrf.mxu3  ;;  %v639_v17 = vadd.f32 %v2208_v60, %v2046_v54 }
 0x295   : > { %v821_v50 = vpop.f32.mrf.mxu0  ;;  %v910_v45 = vpop.f32.mrf.mxu1 }
 0x296   : > { %v822_v10 = vadd.f32 %v821_v50, %v2010_v13  ;;  %v911_v35 = vadd.f32 %v910_v45, %v2013_v23  ;;  %v1071_v42 = vmax.f32 %v639_v17, 0.0 }
 0x298   : > { %v1085_v50 = vmax.f32 %v822_v10, 0.0  ;;  %v1086_v15 = vmax.f32 %v911_v35, 0.0 }
 0x29a   : > { %v1291_v31 = vadd.f32 %v1290_v9, %v1085_v50  ;;  %v1328_v22 = vadd.f32 %v1327_v25, %v1086_v15 }
 0x29b   : > { %v2212_v6 = vpop.f32.mrf.mxu2 }
 0x29c   : > { %v2214_v0 = vpop.f32.mrf.mxu3  ;;  %v641_v14 = vadd.f32 %v2212_v6, %v2046_v54 }
 0x29d   : > { %v823_v12 = vpop.f32.mrf.mxu0  ;;  %v912_v24 = vpop.f32.mrf.mxu1  ;;  %v730_v10 = vadd.f32 %v2214_v0, %v2049_v57 }
 0x29e   : > { %v824_v59 = vadd.f32 %v823_v12, %v2010_v13  ;;  %v913_v33 = vadd.f32 %v912_v24, %v2013_v23  ;;  %v725_v12 = vadd.f32 %v2206_v63, %v2049_v57  ;;  %v1077_v52 = vmax.f32 %v641_v14, 0.0 }
 0x29f   : > { %v1078_v50 = vmax.f32 %v730_v10, 0.0 }
 0x2a0   : > { %v1091_v11 = vmax.f32 %v824_v59, 0.0  ;;  %v1092_v28 = vmax.f32 %v913_v33, 0.0  ;;  %v1066_v55 = vmax.f32 %v725_v12, 0.0 }
 0x2a2   : > { %v1292_v60 = vadd.f32 %v1291_v31, %v1091_v11  ;;  %v1329_v38 = vadd.f32 %v1328_v22, %v1092_v28  ;;  %v1251_v4 = vadd.f32 %v1250_v62, %v1066_v55 }
 0x2a3   : > { %v2216_v26 = vpop.f32.mrf.mxu2 }
 0x2a4   : > { %v2218_v56 = vpop.f32.mrf.mxu3  ;;  %v644_v20 = vadd.f32 %v2216_v26, %v2046_v54 }
 0x2a5   : > { %v826_v36 = vpop.f32.mrf.mxu0  ;;  %v915_v58 = vpop.f32.mrf.mxu1  ;;  %v733_v44 = vadd.f32 %v2218_v56, %v2049_v57 }
 0x2a6   : > { %v827_v45 = vadd.f32 %v826_v36, %v2010_v13  ;;  %v916_v2 = vadd.f32 %v915_v58, %v2013_v23 }
 0x2a7   : > { %v1084_v12 = vmax.f32 %v733_v44, 0.0 }
 0x2a8   : > { %v1097_v34 = vmax.f32 %v827_v45, 0.0  ;;  %v1098_v58 = vmax.f32 %v916_v2, 0.0 }
 0x2aa   : > { %v1293_v46 = vadd.f32 %v1292_v60, %v1097_v34  ;;  %v1330_v16 = vadd.f32 %v1329_v38, %v1098_v58 }
 0x2ab   : > { %v2227_v39 = vpop.f32.mrf.mxu2 }
 0x2ac   : > { %v2230_v41 = vpop.f32.mrf.mxu3  ;;  %v646_v0 = vadd.f32 %v2227_v39, %v2046_v54 }
 0x2ad   : > { %v828_v18 = vpop.f32.mrf.mxu0  ;;  %v917_v21 = vpop.f32.mrf.mxu1  ;;  %v735_v45 = vadd.f32 %v2230_v41, %v2049_v57 }
 0x2ae   : > { %v829_v24 = vadd.f32 %v828_v18, %v2010_v13  ;;  %v918_v36 = vadd.f32 %v917_v21, %v2013_v23  ;;  %v728_v18 = vadd.f32 %v2210_v32, %v2049_v57  ;;  %v1214_v21 = vadd.f32 %v1213_v27, %v1065_v30 }
 0x2af   : > { %v1089_v9 = vmax.f32 %v646_v0, 0.0  ;;  %v1090_v17 = vmax.f32 %v735_v45, 0.0 }
 0x2b0   : > { %v1103_v7 = vmax.f32 %v829_v24, 0.0  ;;  %v1104_v43 = vmax.f32 %v918_v36, 0.0  ;;  %v1072_v59 = vmax.f32 %v728_v18, 0.0 }
 0x2b2   : > { %v1294_v61 = vadd.f32 %v1293_v46, %v1103_v7  ;;  %v1331_v26 = vadd.f32 %v1330_v16, %v1104_v43  ;;  %v1252_v56 = vadd.f32 %v1251_v4, %v1072_v59 }
 0x2b3   : > { %v2244_v5 = vpop.f32.mrf.mxu2 }
 0x2b4   : > { %v2247_v29 = vpop.f32.mrf.mxu3  ;;  %v1253_v25 = vadd.f32 %v1252_v56, %v1078_v50 }
 0x2b5   : > { %v831_v40 = vpop.f32.mrf.mxu0  ;;  %v920_v8 = vpop.f32.mrf.mxu1  ;;  %v738_v39 = vadd.f32 %v2247_v29, %v2049_v57 }
 0x2b6   : > { %v832_v63 = vadd.f32 %v831_v40, %v2010_v13  ;;  %v921_v3 = vadd.f32 %v920_v8, %v2013_v23  ;;  %v1215_v40 = vadd.f32 %v1214_v21, %v1071_v42  ;;  %v649_v8 = vadd.f32 %v2244_v5, %v2046_v54 }
 0x2b7   : > { %v1254_v31 = vadd.f32 %v1253_v25, %v1084_v12  ;;  %v1096_v34 = vmax.f32 %v738_v39, 0.0 }
 0x2b8   : > { %v1109_v48 = vmax.f32 %v832_v63, 0.0  ;;  %v1110_v6 = vmax.f32 %v921_v3, 0.0  ;;  %v1216_v30 = vadd.f32 %v1215_v40, %v1077_v52  ;;  %v1095_v5 = vmax.f32 %v649_v8, 0.0 }
 0x2b9   : > { %v1255_v3 = vadd.f32 %v1254_v31, %v1090_v17 }
 0x2ba   : > { %v1332_v47 = vadd.f32 %v1331_v26, %v1110_v6 }
 0x2bb   : > { %v650_v37 = vpop.f32.mrf.mxu2  ;;  %v1256_v7 = vadd.f32 %v1255_v3, %v1096_v34 }
 0x2bc   : > { %v739_v19 = vpop.f32.mrf.mxu3  ;;  %v651_v11 = vadd.f32 %v650_v37, %v2046_v54 }
 0x2bd   : > { %v833_v32 = vpop.f32.mrf.mxu0  ;;  %v922_v35 = vpop.f32.mrf.mxu1  ;;  %v740_v28 = vadd.f32 %v739_v19, %v2049_v57 }
 0x2be   : > { %v834_v53 = vadd.f32 %v833_v32, %v2010_v13  ;;  %v923_v49 = vadd.f32 %v922_v35, %v2013_v23  ;;  %v1295_v13 = vadd.f32 %v1294_v61, %v1109_v48  ;;  %v1083_v23 = vmax.f32 %v644_v20, 0.0 }
 0x2bf   : > { %v1101_v22 = vmax.f32 %v651_v11, 0.0  ;;  %v1102_v18 = vmax.f32 %v740_v28, 0.0 }
 0x2c0   : > { %v1115_v33 = vmax.f32 %v834_v53, 0.0  ;;  %v1116_v27 = vmax.f32 %v923_v49, 0.0  ;;  %v1217_v36 = vadd.f32 %v1216_v30, %v1083_v23 }
 0x2c1   : > { %v1257_v20 = vadd.f32 %v1256_v7, %v1102_v18 }
 0x2c2   : > { %v1296_v15 = vadd.f32 %v1295_v13, %v1115_v33  ;;  %v1333_v24 = vadd.f32 %v1332_v47, %v1116_v27  ;;  %v1218_v55 = vadd.f32 %v1217_v36, %v1089_v9  ;;  %v1117_v9 = vld [vmem:[%s1695_s23] sm:$0x3f] }
 0x2c3   : > { %v653_v2 = vpop.f32.mrf.mxu2 }
 0x2c4   : > { %v742_v41 = vpop.f32.mrf.mxu3  ;;  %v654_v62 = vadd.f32 %v653_v2, %v2046_v54  ;;  %v1297_v63 = vrot.slane %v1296_v15, 4  ;;  %v1334_v58 = vrot.slane %v1333_v24, 4  ;;  %v1219_v14 = vadd.f32 %v1218_v55, %v1095_v5 }
 0x2c5   : > { %v743_v29 = vadd.f32 %v742_v41, %v2049_v57 }
 0x2c6   : > { %v1107_v60 = vmax.f32 %v654_v62, 0.0  ;;  %v1298_v37 = vadd.f32 %v1297_v63, %v1296_v15  ;;  %v1220_v38 = vadd.f32 %v1219_v14, %v1101_v22  ;;  %v1335_v43 = vadd.f32 %v1334_v58, %v1333_v24 }
 0x2c7   : > { %v1108_v21 = vmax.f32 %v743_v29, 0.0 }
 0x2c8   : > { %v1221_v48 = vadd.f32 %v1220_v38, %v1107_v60  ;;  %v1299_v35 = vrot.slane %v1298_v37, 2  ;;  %v1336_v53 = vrot.slane %v1335_v43, 2 }
 0x2c9   : > { %v1258_v16 = vadd.f32 %v1257_v20, %v1108_v21 }
 0x2ca   : > { %v1300_v44 = vadd.f32 %v1299_v35, %v1298_v37  ;;  %v1337_v0 = vadd.f32 %v1336_v53, %v1335_v43 }
 0x2cb   : > { %v655_v42 = vpop.f32.mrf.mxu2 }
 0x2cc   : > { %v656_v19 = vadd.f32 %v655_v42, %v2046_v54  ;;  %v744_v10 = vpop.f32.mrf.mxu3  ;;  %v1301_v54 = vrot.slane %v1300_v44, 1  ;;  %v1338_v50 = vrot.slane %v1337_v0, 1 }
 0x2cd   : > { %v745_v46 = vadd.f32 %v744_v10, %v2049_v57 }
 0x2ce   : > { %v1113_v32 = vmax.f32 %v656_v19, 0.0  ;;  %v1302_v40 = vadd.f32 %v1301_v54, %v1300_v44  ;;  %v1339_v8 = vadd.f32 %v1338_v50, %v1337_v0 }
 0x2cf   : > { %v1114_v6 = vmax.f32 %v745_v46, 0.0 }
 0x2d0   : > { %v1222_v49 = vadd.f32 %v1221_v48, %v1113_v32  ;;  %v1349_v39 = vrot.slane %v1302_v40, 4  ;;  %v1350_v2 = vrot.slane %v1339_v8, 3 }
 0x2d1   : > { %v1259_v59 = vadd.f32 %v1258_v16, %v1114_v6 }
 0x2d2   : > { %v1223_v52 = vrot.slane %v1222_v49, 4 }
 0x2d3   : > { %v1260_v61 = vrot.slane %v1259_v59, 4 }
 0x2d4   : > { %v1224_v26 = vadd.f32 %v1223_v52, %v1222_v49 }
 0x2d5   : > { %v1261_v33 = vadd.f32 %v1260_v61, %v1259_v59 }
 0x2d6   : > { %v1225_v27 = vrot.slane %v1224_v26, 2 }
 0x2d7   : > { %v1262_v4 = vrot.slane %v1261_v33, 2 }
 0x2d8   : > { %v1226_v45 = vadd.f32 %v1225_v27, %v1224_v26 }
 0x2d9   : > { %v1263_v57 = vadd.f32 %v1262_v4, %v1261_v33 }
 0x2da   : > { %v1227_v13 = vrot.slane %v1226_v45, 1 }
 0x2db   : > { %v1264_v23 = vrot.slane %v1263_v57, 1 }
 0x2dc   : > { %v1228_v47 = vadd.f32 %v1227_v13, %v1226_v45 }
 0x2dd   : > { %v1265_v56 = vadd.f32 %v1264_v23, %v1263_v57 }
 0x2de   : > { %v1347_v12 = vrot.slane %v1228_v47, 6 }
 0x2df   : > { %v1348_v15 = vrot.slane %v1265_v56, 5 }
 0x2e0   : > { %v1352_v30 = vsel %vm376_vm2, %v2096_v51, %v1347_v12 }
 0x2e1   : > { %v1354_v11 = vsel %vm1353_vm4, %v1348_v15, %v1349_v39 }
 0x2e2   : > { %v1356_v24 = vsel %vm1355_vm5, %v1354_v11, %v1350_v2 }
 0x2e3   : > { %v1358_v41 = vsel %vm1357_vm6, %v1352_v30, %v1356_v24 }
 0x2e4   : > { %v1360_v25 = vadd.f32 %v1358_v41, %v1117_v9 }
 0x2e6   : > { %1365 = vst.msk [vmem:[%s1695_s23] sm:$0x3f] %vm1685_vm0, %v1360_v25 }
 0x2ed   : > { %v1369_v17 = vld [vmem:[%s1695_s23] sm:$0x3f] }
 0x2ee   : > { %v1370_v28 = vmul.f32 0.00390625, %v1369_v17 }
 0x2f0   : > { %1371 = vst.msk [vmem:[%s1695_s23] sm:$0x3f] %vm1685_vm0, %v1370_v28 }
 0x2f1 PF: > { %s13_s14 = sadd.s32 1, %s1643_s14   ;;  %s2310_s12 = smov %s1639_s13 }
 0x2f2   : > { %p10_p5 = scmp.ge.s32.totalorder %s13_s14, 4   ;;  %s2311_s13 = smov %s2313_s15 }
 0x2f4   :  { %12 = sbr.rel (!%p10_p5) target bundleno = 2 (0x2), region = 77 }

</bundles_post_ra>
